<compile_context>
chip_gen: v6e
topology: v6e:2x2x1
jax: 0.10.0
libtpu: 0.0.40
codegen_flags: <defaults>
</compile_context>

<pallas_src>
import functools

import jax
import jax.numpy as jnp
from jax import lax
from jax.experimental import pallas as pl
from jax.experimental.pallas import tpu as pltpu


# ---------------- small config (same structure as SiglipVisionConfig) ----------------
CONFIG = dict(
    hidden_size=128,
    intermediate_size=256,
    num_hidden_layers=2,
    num_attention_heads=4,
    num_channels=3,
    image_size=16,
    patch_size=4,
    layer_norm_eps=1e-6,
)


# ---------------- shared math helpers (used both inside the kernels and in the ref) ----
def _layernorm(x, w, b, eps):
    mean = jnp.mean(x, axis=-1, keepdims=True)
    var = jnp.mean(jnp.square(x - mean), axis=-1, keepdims=True)
    return (x - mean) * lax.rsqrt(var + eps) * w + b


def _gelu_tanh(x):
    c = 0.7978845608028654  # sqrt(2/pi)
    return 0.5 * x * (1.0 + jnp.tanh(c * (x + 0.044715 * x * x * x)))


# ------------------------------- kernel 1: patch + position embedding ------------------
def embed_kernel(patches_ref, pw_ref, pb_ref, pos_ref, o_ref):
    o_ref[...] = (
        jnp.dot(patches_ref[...], pw_ref[...], preferred_element_type=jnp.float32)
        + pb_ref[...]
        + pos_ref[...]
    )


# ------------------------------- kernel 2: fused encoder + post-LN ---------------------
def encoder_kernel(
    emb_ref, vecs_ref, b1_ref, wqkv_ref, wo_ref, w1_ref, w2_ref,
    postw_ref, postb_ref,
    o_ref,
    *, num_heads, head_dim, eps,
):
    l = pl.program_id(1)

    # Seed the resident activation slab from the embedding on the first layer.
    @pl.when(l == 0)
    def _seed():
        o_ref[...] = emb_ref[...]

    x = o_ref[...]                               # (N, D) f32, resident across layers

    # Packed per-layer vectors: rows = ln1_w, ln1_b, ln2_w, ln2_b, bq, bk, bv, bo, b2
    ln1_w = vecs_ref[0, 0:1, :]
    ln1_b = vecs_ref[0, 1:2, :]
    ln2_w = vecs_ref[0, 2:3, :]
    ln2_b = vecs_ref[0, 3:4, :]
    bq = vecs_ref[0, 4:5, :]
    bk = vecs_ref[0, 5:6, :]
    bv = vecs_ref[0, 6:7, :]
    bo = vecs_ref[0, 7:8, :]
    b2 = vecs_ref[0, 8:9, :]
    b1 = b1_ref[0]                               # (1, I)

    N, D = x.shape
    nh, hd = num_heads, head_dim

    # ---- layer_norm1 (f32) ----
    xn = _layernorm(x, ln1_w, ln1_b, eps)

    # ---- fused QKV projection: one lane-dense (N, D) x (D, 3D) bf16 matmul ----
    qkv = jnp.dot(xn.astype(jnp.bfloat16), wqkv_ref[0],
                  preferred_element_type=jnp.float32)            # (N, 3D) f32
    q = qkv[:, 0:D] + bq            # attention scale pre-folded into wq / bq
    k = qkv[:, D:2 * D] + bk
    v = qkv[:, 2 * D:3 * D] + bv

    # ---- per-head attention (2-D ops only), softmax stats in f32 ----
    ctx_parts = []
    for h in range(nh):
        sl = slice(h * hd, (h + 1) * hd)
        qh = q[:, sl].astype(jnp.bfloat16)                       # (N, hd)
        kh = k[:, sl].astype(jnp.bfloat16)                       # (N, hd)
        vh = v[:, sl].astype(jnp.bfloat16)                       # (N, hd)
        logits = lax.dot_general(qh, kh, (((1,), (1,)), ((), ())),
                                 preferred_element_type=jnp.float32)   # (N, N)
        logits = logits - jnp.max(logits, axis=-1, keepdims=True)
        e = jnp.exp(logits)
        p = e * pl.reciprocal(jnp.sum(e, axis=-1, keepdims=True), approx=True)
        ctx_parts.append(jnp.dot(p.astype(jnp.bfloat16), vh,
                                 preferred_element_type=jnp.float32))  # (N, hd)
    # TODO(synk): at real SigLIP N (~729) this should become flash-style key
    # tiling with a running max/denominator instead of full (N, N) logits.
    ctx = jnp.concatenate(ctx_parts, axis=1)                     # (N, D)

    # ---- single out-projection: K = D contraction, no per-head matmuls / head sum ----
    attn = jnp.dot(ctx.astype(jnp.bfloat16), wo_ref[0],
                   preferred_element_type=jnp.float32) + bo      # (N, D)

    # residual on the *normalized* input (matches the provided PyTorch module)
    h1 = attn + xn

    # ---- layer_norm2 + MLP (GELU in f32) ----
    hn = _layernorm(h1, ln2_w, ln2_b, eps)
    m = jnp.dot(hn.astype(jnp.bfloat16), w1_ref[0],
                preferred_element_type=jnp.float32) + b1
    m = _gelu_tanh(m)
    m = jnp.dot(m.astype(jnp.bfloat16), w2_ref[0],
                preferred_element_type=jnp.float32) + b2
    out = m + hn

    o_ref[...] = out

    # ---- post layernorm on the last layer ----
    @pl.when(l == pl.num_programs(1) - 1)
    def _final():
        o_ref[...] = _layernorm(out, postw_ref[...], postb_ref[...], eps)


# ------------------------------- weight prep (one-time host transform) -----------------
def prepare_params(params, cfg):
    D = cfg["hidden_size"]
    nh = cfg["num_attention_heads"]
    hd = D // nh
    P = cfg["patch_size"]
    C = cfg["num_channels"]
    K = C * P * P
    Kp = ((K + 127) // 128) * 128
    scale = hd ** -0.5
    layers = params["layers"]

    # fused QKV weight, attention scale folded into the Q portion, bf16 for the MXU
    wqkv = jnp.stack(
        [jnp.concatenate([lp["wq"] * scale, lp["wk"], lp["wv"]], axis=1) for lp in layers]
    ).astype(jnp.bfloat16)                                              # (L, D, 3D)
    wo = jnp.stack([lp["wo"] for lp in layers]).astype(jnp.bfloat16)    # (L, D, D)
    w1 = jnp.stack([lp["w1"] for lp in layers]).astype(jnp.bfloat16)    # (L, D, I)
    w2 = jnp.stack([lp["w2"] for lp in layers]).astype(jnp.bfloat16)    # (L, I, D)

    # packed per-layer vectors (f32): ln1_w, ln1_b, ln2_w, ln2_b, bq*scale, bk, bv, bo, b2
    vecs = jnp.stack(
        [jnp.concatenate(
            [lp["ln1_w"], lp["ln1_b"], lp["ln2_w"], lp["ln2_b"],
             lp["bq"] * scale, lp["bk"], lp["bv"], lp["bo"], lp["b2"]], axis=0)
         for lp in layers]
    )                                                                   # (L, 9, D)
    b1 = jnp.stack([lp["b1"] for lp in layers])                         # (L, 1, I)

    patch_w = jnp.pad(params["patch_w"], ((0, Kp - K), (0, 0)))         # (Kp, D) lane-dense

    return dict(
        wqkv=wqkv, wo=wo, w1=w1, w2=w2, vecs=vecs, b1=b1,
        patch_w=patch_w, patch_b=params["patch_b"], pos_emb=params["pos_emb"],
        post_ln_w=params["post_ln_w"], post_ln_b=params["post_ln_b"],
    )


# ------------------------------- wrapper -------------------------------------------------
def siglip_vision_forward(pixel_values, prep, cfg):
    B, C, H, W = pixel_values.shape
    P = cfg["patch_size"]
    D = cfg["hidden_size"]
    I = cfg["intermediate_size"]
    nh = cfg["num_attention_heads"]
    hd = D // nh
    eps = cfg["layer_norm_eps"]
    L = cfg["num_hidden_layers"]
    nH, nW = H // P, W // P
    N = nH * nW
    K = C * P * P
    Kp = prep["patch_w"].shape[0]
    BN = B * N

    # non-overlapping PxP patches (== the stride-P valid conv expressed as a matmul)
    patches = pixel_values.reshape(B, C, nH, P, nW, P)
    patches = patches.transpose(0, 2, 4, 1, 3, 5).reshape(BN, K)
    patches = jnp.pad(patches, ((0, 0), (0, Kp - K)))

    # ---- kernel 1: patch + position embedding, grid over images ----
    emb = pl.pallas_call(
        embed_kernel,
        out_shape=jax.ShapeDtypeStruct((BN, D), jnp.float32),
        grid=(B,),
        in_specs=[
            pl.BlockSpec((N, Kp), lambda b: (b, 0)),       # patches (per image)
            pl.BlockSpec((Kp, D), lambda b: (0, 0)),       # patch weight
            pl.BlockSpec((1, D), lambda b: (0, 0)),        # patch bias
            pl.BlockSpec((N, D), lambda b: (0, 0)),        # position embedding (shared)
        ],
        out_specs=pl.BlockSpec((N, D), lambda b: (b, 0)),
        compiler_params=pltpu.CompilerParams(dimension_semantics=("parallel",)),
    )(patches, prep["patch_w"], prep["patch_b"], prep["pos_emb"])

    # ---- kernel 2: all encoder layers + post-LN, grid (images, layers) ----
    kernel = functools.partial(encoder_kernel, num_heads=nh, head_dim=hd, eps=eps)
    out = pl.pallas_call(
        kernel,
        out_shape=jax.ShapeDtypeStruct((BN, D), jnp.float32),
        grid=(B, L),
        in_specs=[
            pl.BlockSpec((N, D), lambda b, l: (b, 0)),            # embeddings (seed, per image)
            pl.BlockSpec((1, 9, D), lambda b, l: (l, 0, 0)),      # packed per-layer vectors
            pl.BlockSpec((1, 1, I), lambda b, l: (l, 0, 0)),      # fc1 bias
            pl.BlockSpec((1, D, 3 * D), lambda b, l: (l, 0, 0)),  # fused QKV weight (bf16)
            pl.BlockSpec((1, D, D), lambda b, l: (l, 0, 0)),      # out-proj weight (bf16)
            pl.BlockSpec((1, D, I), lambda b, l: (l, 0, 0)),      # fc1 weight (bf16)
            pl.BlockSpec((1, I, D), lambda b, l: (l, 0, 0)),      # fc2 weight (bf16)
            pl.BlockSpec((1, D), lambda b, l: (0, 0)),            # post-LN weight
            pl.BlockSpec((1, D), lambda b, l: (0, 0)),            # post-LN bias
        ],
        out_specs=pl.BlockSpec((N, D), lambda b, l: (b, 0)),      # resident per-image slab
        compiler_params=pltpu.CompilerParams(
            dimension_semantics=("parallel", "arbitrary")),
    )(emb, prep["vecs"], prep["b1"], prep["wqkv"], prep["wo"],
      prep["w1"], prep["w2"], prep["post_ln_w"], prep["post_ln_b"])

    return out.reshape(B, N, D)


# ------------------------------- pure-JAX reference -------------------------------------
def reference_forward(pixel_values, params, cfg):
    B, C, H, W = pixel_values.shape
    P = cfg["patch_size"]
    D = cfg["hidden_size"]
    nh = cfg["num_attention_heads"]
    hd = D // nh
    eps = cfg["layer_norm_eps"]
    nH, nW = H // P, W // P
    N = nH * nW
    patches = pixel_values.reshape(B, C, nH, P, nW, P).transpose(0, 2, 4, 1, 3, 5)
    patches = patches.reshape(B, N, C * P * P)
    x = patches @ params["patch_w"] + params["patch_b"] + params["pos_emb"]
    scale = hd ** -0.5
    for lp in params["layers"]:
        xn = _layernorm(x, lp["ln1_w"], lp["ln1_b"], eps)
        q = xn @ lp["wq"] + lp["bq"]
        k = xn @ lp["wk"] + lp["bk"]
        v = xn @ lp["wv"] + lp["bv"]
        qh = q.reshape(B, N, nh, hd).transpose(0, 2, 1, 3)
        kh = k.reshape(B, N, nh, hd).transpose(0, 2, 1, 3)
        vh = v.reshape(B, N, nh, hd).transpose(0, 2, 1, 3)
        logits = jnp.einsum("bhnd,bhmd->bhnm", qh, kh) * scale
        p = jax.nn.softmax(logits, axis=-1)
        ctx = jnp.einsum("bhnm,bhmd->bhnd", p, vh).transpose(0, 2, 1, 3).reshape(B, N, D)
        attn_out = ctx @ lp["wo"] + lp["bo"]
        h1 = attn_out + xn
        hn = _layernorm(h1, lp["ln2_w"], lp["ln2_b"], eps)
        m = _gelu_tanh(hn @ lp["w1"] + lp["b1"])
        x = m @ lp["w2"] + lp["b2"] + hn
    return _layernorm(x, params["post_ln_w"], params["post_ln_b"], eps)


# ------------------------------- deterministic param init -------------------------------
def init_params(key, cfg):
    D = cfg["hidden_size"]
    I = cfg["intermediate_size"]
    C = cfg["num_channels"]
    P = cfg["patch_size"]
    N = (cfg["image_size"] // P) ** 2
    K = C * P * P

    def nrm(k, shape, s=0.02):
        return (s * jax.random.normal(k, shape)).astype(jnp.float32)

    keys = jax.random.split(key, 2 + cfg["num_hidden_layers"])
    params = dict(
        patch_w=nrm(keys[0], (K, D)),
        patch_b=jnp.zeros((1, D), jnp.float32),
        pos_emb=nrm(keys[1], (N, D)),
        post_ln_w=jnp.ones((1, D), jnp.float32),
        post_ln_b=jnp.zeros((1, D), jnp.float32),
        layers=[],
    )
    for li in range(cfg["num_hidden_layers"]):
        lk = jax.random.split(keys[2 + li], 12)
        params["layers"].append(dict(
            ln1_w=jnp.ones((1, D), jnp.float32), ln1_b=jnp.zeros((1, D), jnp.float32),
            wq=nrm(lk[0], (D, D)), bq=nrm(lk[1], (1, D)),
            wk=nrm(lk[2], (D, D)), bk=nrm(lk[3], (1, D)),
            wv=nrm(lk[4], (D, D)), bv=nrm(lk[5], (1, D)),
            wo=nrm(lk[6], (D, D)), bo=nrm(lk[7], (1, D)),
            ln2_w=jnp.ones((1, D), jnp.float32), ln2_b=jnp.zeros((1, D), jnp.float32),
            w1=nrm(lk[8], (D, I)), b1=nrm(lk[9], (1, I)),
            w2=nrm(lk[10], (I, D)), b2=nrm(lk[11], (1, D)),
        ))
    return params


# --------------------------------------- main --------------------------------------------
if __name__ == "__main__":
    cfg = CONFIG
    key = jax.random.PRNGKey(0)
    pkey, ikey = jax.random.split(key)
    params = init_params(pkey, cfg)

    B = 2
    pixel_values = jax.random.normal(
        ikey, (B, cfg["num_channels"], cfg["image_size"], cfg["image_size"]), jnp.float32
    )

    prep = prepare_params(params, cfg)           # one-time weight transform (bf16, fused QKV)

    fwd = jax.jit(functools.partial(siglip_vision_forward, cfg=cfg))
    out = jax.block_until_ready(fwd(pixel_values, prep))

    N = (cfg["image_size"] // cfg["patch_size"]) ** 2
    assert out.shape == (B, N, cfg["hidden_size"]), out.shape

    ref = reference_forward(pixel_values, params, cfg)
    max_err = float(jnp.max(jnp.abs(out - ref)))
    # tolerance accounts for bf16 matmul operands + approx-reciprocal softmax denominator
    assert jnp.allclose(out, ref, atol=3e-2, rtol=3e-2), f"max_err={max_err}"

    print("KERNEL_OK")
</pallas_src>

<mosaic_0001>
module attributes {stable_mosaic.version = 11 : i64} {
  func.func @embed_kernel(%arg0: i32, %arg1: memref<16x128xf32, #tpu.memory_space<vmem>>, %arg2: memref<128x128xf32, #tpu.memory_space<vmem>>, %arg3: memref<1x128xf32, #tpu.memory_space<vmem>>, %arg4: memref<16x128xf32, #tpu.memory_space<vmem>>, %arg5: memref<16x128xf32, #tpu.memory_space<vmem>>) attributes {dimension_semantics = [#tpu.dimension_semantics<parallel>], iteration_bounds = array<i64: 2>, scalar_prefetch = 0 : i64, scratch_operands = 0 : i64, tpu.core_type = #tpu.core_type<tc>, window_params = [{transform_indices = @transform_0, window_bounds = array<i64: 16, 128>}, {pipeline_mode = #tpu.pipeline_mode<synchronous>, transform_indices = @transform_1, window_bounds = array<i64: 128, 128>}, {pipeline_mode = #tpu.pipeline_mode<synchronous>, transform_indices = @transform_2, window_bounds = array<i64: 1, 128>}, {pipeline_mode = #tpu.pipeline_mode<synchronous>, transform_indices = @transform_3, window_bounds = array<i64: 16, 128>}, {transform_indices = @transform_4, window_bounds = array<i64: 16, 128>}]} {
    %c0 = arith.constant 0 : index
    %c0_0 = arith.constant 0 : index
    %0 = vector.load %arg1[%c0, %c0_0] : memref<16x128xf32, #tpu.memory_space<vmem>>, vector<16x128xf32>
    %c0_1 = arith.constant 0 : index
    %c0_2 = arith.constant 0 : index
    %1 = vector.load %arg2[%c0_1, %c0_2] : memref<128x128xf32, #tpu.memory_space<vmem>>, vector<128x128xf32>
    %cst = arith.constant dense<0.000000e+00> : vector<16x128xf32>
    %2 = tpu.matmul %0, %1, %cst {dimension_numbers = #tpu.dot_dimension_numbers<[1], [0], [0], [1], [0, 0, 1, 1], [], []>} : vector<16x128xf32>, vector<128x128xf32>, vector<16x128xf32> -> vector<16x128xf32>
    %c0_3 = arith.constant 0 : index
    %c0_4 = arith.constant 0 : index
    %3 = vector.load %arg3[%c0_3, %c0_4] : memref<1x128xf32, #tpu.memory_space<vmem>>, vector<1x128xf32>
    %4 = vector.broadcast %3 : vector<1x128xf32> to vector<16x128xf32>
    %5 = arith.addf %2, %4 : vector<16x128xf32>
    %c0_5 = arith.constant 0 : index
    %c0_6 = arith.constant 0 : index
    %6 = vector.load %arg4[%c0_5, %c0_6] : memref<16x128xf32, #tpu.memory_space<vmem>>, vector<16x128xf32>
    %7 = arith.addf %5, %6 : vector<16x128xf32>
    %c0_7 = arith.constant 0 : index
    %c0_8 = arith.constant 0 : index
    %8 = vector.load %arg5[%c0_7, %c0_8] : memref<16x128xf32, #tpu.memory_space<vmem>>, vector<16x128xf32>
    tpu.vector_store %arg5[%c0_7, %c0_8], %7 {strides = array<i32>} : memref<16x128xf32, #tpu.memory_space<vmem>>, vector<16x128xf32>,
    return
  }
  func.func @transform_0(%arg0: i32) -> (i32, i32) {
    %c0_i32 = arith.constant 0 : i32
    %c0_i32_0 = arith.constant 0 : i32
    return %arg0, %c0_i32 : i32, i32
  }
  func.func @transform_1(%arg0: i32) -> (i32, i32) {
    %c0_i32 = arith.constant 0 : i32
    %c0_i32_0 = arith.constant 0 : i32
    %c0_i32_1 = arith.constant 0 : i32
    return %c0_i32, %c0_i32_0 : i32, i32
  }
  func.func @transform_2(%arg0: i32) -> (i32, i32) {
    %c0_i32 = arith.constant 0 : i32
    %c0_i32_0 = arith.constant 0 : i32
    %c0_i32_1 = arith.constant 0 : i32
    return %c0_i32, %c0_i32_0 : i32, i32
  }
  func.func @transform_3(%arg0: i32) -> (i32, i32) {
    %c0_i32 = arith.constant 0 : i32
    %c0_i32_0 = arith.constant 0 : i32
    %c0_i32_1 = arith.constant 0 : i32
    return %c0_i32, %c0_i32_0 : i32, i32
  }
  func.func @transform_4(%arg0: i32) -> (i32, i32) {
    %c0_i32 = arith.constant 0 : i32
    %c0_i32_0 = arith.constant 0 : i32
    return %arg0, %c0_i32 : i32, i32
  }
}

module attributes {stable_mosaic.version = 11 : i64} {
  func.func @encoder_kernel(%arg0: i32, %arg1: i32, %arg2: memref<16x128xf32, #tpu.memory_space<vmem>>, %arg3: memref<1x9x128xf32, #tpu.memory_space<vmem>>, %arg4: memref<1x1x256xf32, #tpu.memory_space<vmem>>, %arg5: memref<1x128x384xbf16, #tpu.memory_space<vmem>>, %arg6: memref<1x128x128xbf16, #tpu.memory_space<vmem>>, %arg7: memref<1x128x256xbf16, #tpu.memory_space<vmem>>, %arg8: memref<1x256x128xbf16, #tpu.memory_space<vmem>>, %arg9: memref<1x128xf32, #tpu.memory_space<vmem>>, %arg10: memref<1x128xf32, #tpu.memory_space<vmem>>, %arg11: memref<16x128xf32, #tpu.memory_space<vmem>>) attributes {dimension_semantics = [#tpu.dimension_semantics<parallel>, #tpu.dimension_semantics<arbitrary>], iteration_bounds = array<i64: 2, 2>, scalar_prefetch = 0 : i64, scratch_operands = 0 : i64, tpu.core_type = #tpu.core_type<tc>, window_params = [{transform_indices = @transform_0, window_bounds = array<i64: 16, 128>}, {transform_indices = @transform_1, window_bounds = array<i64: 1, 9, 128>}, {transform_indices = @transform_2, window_bounds = array<i64: 1, 1, 256>}, {transform_indices = @transform_3, window_bounds = array<i64: 1, 128, 384>}, {transform_indices = @transform_4, window_bounds = array<i64: 1, 128, 128>}, {transform_indices = @transform_5, window_bounds = array<i64: 1, 128, 256>}, {transform_indices = @transform_6, window_bounds = array<i64: 1, 256, 128>}, {pipeline_mode = #tpu.pipeline_mode<synchronous>, transform_indices = @transform_7, window_bounds = array<i64: 1, 128>}, {pipeline_mode = #tpu.pipeline_mode<synchronous>, transform_indices = @transform_8, window_bounds = array<i64: 1, 128>}, {transform_indices = @transform_9, window_bounds = array<i64: 16, 128>}]} {
    %c0_i32 = arith.constant 0 : i32
    %0 = arith.cmpi eq, %arg1, %c0_i32 : i32
    %1 = arith.extui %0 : i1 to i32
    %c0_i32_0 = arith.constant 0 : i32
    %2 = arith.cmpi ne, %1, %c0_i32_0 : i32
    scf.if %2 {
      %c0_72 = arith.constant 0 : index
      %c0_73 = arith.constant 0 : index
      %195 = vector.load %arg2[%c0_72, %c0_73] : memref<16x128xf32, #tpu.memory_space<vmem>>, vector<16x128xf32>
      %c0_74 = arith.constant 0 : index
      %c0_75 = arith.constant 0 : index
      %196 = vector.load %arg11[%c0_74, %c0_75] : memref<16x128xf32, #tpu.memory_space<vmem>>, vector<16x128xf32>
      tpu.vector_store %arg11[%c0_74, %c0_75], %195 {strides = array<i32>} : memref<16x128xf32, #tpu.memory_space<vmem>>, vector<16x128xf32>,
    } else {
    }
    %c0 = arith.constant 0 : index
    %c0_1 = arith.constant 0 : index
    %3 = vector.load %arg11[%c0, %c0_1] : memref<16x128xf32, #tpu.memory_space<vmem>>, vector<16x128xf32>
    %c0_2 = arith.constant 0 : index
    %c0_3 = arith.constant 0 : index
    %c0_4 = arith.constant 0 : index
    %4 = vector.load %arg3[%c0_2, %c0_3, %c0_4] : memref<1x9x128xf32, #tpu.memory_space<vmem>>, vector<1x1x128xf32>
    %5 = vector.shape_cast %4 : vector<1x1x128xf32> to vector<1x128xf32>
    %c0_5 = arith.constant 0 : index
    %c1 = arith.constant 1 : index
    %c0_6 = arith.constant 0 : index
    %6 = vector.load %arg3[%c0_5, %c1, %c0_6] : memref<1x9x128xf32, #tpu.memory_space<vmem>>, vector<1x1x128xf32>
    %7 = vector.shape_cast %6 : vector<1x1x128xf32> to vector<1x128xf32>
    %c0_7 = arith.constant 0 : index
    %c2 = arith.constant 2 : index
    %c0_8 = arith.constant 0 : index
    %8 = vector.load %arg3[%c0_7, %c2, %c0_8] : memref<1x9x128xf32, #tpu.memory_space<vmem>>, vector<1x1x128xf32>
    %9 = vector.shape_cast %8 : vector<1x1x128xf32> to vector<1x128xf32>
    %c0_9 = arith.constant 0 : index
    %c3 = arith.constant 3 : index
    %c0_10 = arith.constant 0 : index
    %10 = vector.load %arg3[%c0_9, %c3, %c0_10] : memref<1x9x128xf32, #tpu.memory_space<vmem>>, vector<1x1x128xf32>
    %11 = vector.shape_cast %10 : vector<1x1x128xf32> to vector<1x128xf32>
    %c0_11 = arith.constant 0 : index
    %c4 = arith.constant 4 : index
    %c0_12 = arith.constant 0 : index
    %12 = vector.load %arg3[%c0_11, %c4, %c0_12] : memref<1x9x128xf32, #tpu.memory_space<vmem>>, vector<1x1x128xf32>
    %13 = vector.shape_cast %12 : vector<1x1x128xf32> to vector<1x128xf32>
    %c0_13 = arith.constant 0 : index
    %c5 = arith.constant 5 : index
    %c0_14 = arith.constant 0 : index
    %14 = vector.load %arg3[%c0_13, %c5, %c0_14] : memref<1x9x128xf32, #tpu.memory_space<vmem>>, vector<1x1x128xf32>
    %15 = vector.shape_cast %14 : vector<1x1x128xf32> to vector<1x128xf32>
    %c0_15 = arith.constant 0 : index
    %c6 = arith.constant 6 : index
    %c0_16 = arith.constant 0 : index
    %16 = vector.load %arg3[%c0_15, %c6, %c0_16] : memref<1x9x128xf32, #tpu.memory_space<vmem>>, vector<1x1x128xf32>
    %17 = vector.shape_cast %16 : vector<1x1x128xf32> to vector<1x128xf32>
    %c0_17 = arith.constant 0 : index
    %c7 = arith.constant 7 : index
    %c0_18 = arith.constant 0 : index
    %18 = vector.load %arg3[%c0_17, %c7, %c0_18] : memref<1x9x128xf32, #tpu.memory_space<vmem>>, vector<1x1x128xf32>
    %19 = vector.shape_cast %18 : vector<1x1x128xf32> to vector<1x128xf32>
    %c0_19 = arith.constant 0 : index
    %c8 = arith.constant 8 : index
    %c0_20 = arith.constant 0 : index
    %20 = vector.load %arg3[%c0_19, %c8, %c0_20] : memref<1x9x128xf32, #tpu.memory_space<vmem>>, vector<1x1x128xf32>
    %21 = vector.shape_cast %20 : vector<1x1x128xf32> to vector<1x128xf32>
    %c0_21 = arith.constant 0 : index
    %c0_22 = arith.constant 0 : index
    %c0_23 = arith.constant 0 : index
    %22 = vector.load %arg4[%c0_21, %c0_22, %c0_23] : memref<1x1x256xf32, #tpu.memory_space<vmem>>, vector<1x1x256xf32>
    %23 = vector.shape_cast %22 : vector<1x1x256xf32> to vector<1x256xf32>
    %cst = arith.constant dense<0.000000e+00> : vector<16xf32>
    %24 = vector.multi_reduction <add>, %3, %cst [1] : vector<16x128xf32> to vector<16xf32>
    %25 = vector.shape_cast %24 : vector<16xf32> to vector<16x1xf32>
    %cst_24 = arith.constant 1.280000e+02 : f32
    %26 = vector.broadcast %cst_24 : f32 to vector<16x1xf32>
    %27 = arith.divf %25, %26 : vector<16x1xf32>
    %28 = vector.broadcast %27 : vector<16x1xf32> to vector<16x128xf32>
    %29 = arith.subf %3, %28 : vector<16x128xf32>
    %30 = arith.mulf %29, %29 : vector<16x128xf32>
    %cst_25 = arith.constant dense<0.000000e+00> : vector<16xf32>
    %31 = vector.multi_reduction <add>, %30, %cst_25 [1] : vector<16x128xf32> to vector<16xf32>
    %32 = vector.shape_cast %31 : vector<16xf32> to vector<16x1xf32>
    %cst_26 = arith.constant 1.280000e+02 : f32
    %33 = vector.broadcast %cst_26 : f32 to vector<16x1xf32>
    %34 = arith.divf %32, %33 : vector<16x1xf32>
    %35 = vector.broadcast %27 : vector<16x1xf32> to vector<16x128xf32>
    %36 = arith.subf %3, %35 : vector<16x128xf32>
    %cst_27 = arith.constant 9.99999997E-7 : f32
    %37 = vector.broadcast %cst_27 : f32 to vector<16x1xf32>
    %38 = arith.addf %34, %37 : vector<16x1xf32>
    %39 = math.rsqrt %38 : vector<16x1xf32>
    %40 = vector.broadcast %39 : vector<16x1xf32> to vector<16x128xf32>
    %41 = arith.mulf %36, %40 : vector<16x128xf32>
    %42 = vector.broadcast %5 : vector<1x128xf32> to vector<16x128xf32>
    %43 = arith.mulf %41, %42 : vector<16x128xf32>
    %44 = vector.broadcast %7 : vector<1x128xf32> to vector<16x128xf32>
    %45 = arith.addf %43, %44 : vector<16x128xf32>
    %46 = arith.truncf %45 : vector<16x128xf32> to vector<16x128xbf16>
    %c0_28 = arith.constant 0 : index
    %c0_29 = arith.constant 0 : index
    %c0_30 = arith.constant 0 : index
    %47 = vector.load %arg5[%c0_28, %c0_29, %c0_30] : memref<1x128x384xbf16, #tpu.memory_space<vmem>>, vector<1x128x384xbf16>
    %48 = vector.shape_cast %47 : vector<1x128x384xbf16> to vector<128x384xbf16>
    %cst_31 = arith.constant dense<0.000000e+00> : vector<16x384xf32>
    %49 = tpu.matmul %46, %48, %cst_31 {dimension_numbers = #tpu.dot_dimension_numbers<[1], [0], [0], [1], [0, 0, 1, 1], [], []>} : vector<16x128xbf16>, vector<128x384xbf16>, vector<16x384xf32> -> vector<16x384xf32>
    %50 = vector.extract_strided_slice %49 {offsets = [0, 0], sizes = [16, 128], strides = [1, 1]} : vector<16x384xf32> to vector<16x128xf32>
    %51 = vector.broadcast %13 : vector<1x128xf32> to vector<16x128xf32>
    %52 = arith.addf %50, %51 : vector<16x128xf32>
    %53 = vector.extract_strided_slice %49 {offsets = [0, 128], sizes = [16, 128], strides = [1, 1]} : vector<16x384xf32> to vector<16x128xf32>
    %54 = vector.broadcast %15 : vector<1x128xf32> to vector<16x128xf32>
    %55 = arith.addf %53, %54 : vector<16x128xf32>
    %56 = vector.extract_strided_slice %49 {offsets = [0, 256], sizes = [16, 128], strides = [1, 1]} : vector<16x384xf32> to vector<16x128xf32>
    %57 = vector.broadcast %17 : vector<1x128xf32> to vector<16x128xf32>
    %58 = arith.addf %56, %57 : vector<16x128xf32>
    %59 = vector.extract_strided_slice %52 {offsets = [0, 0], sizes = [16, 32], strides = [1, 1]} : vector<16x128xf32> to vector<16x32xf32>
    %60 = arith.truncf %59 : vector<16x32xf32> to vector<16x32xbf16>
    %61 = vector.extract_strided_slice %55 {offsets = [0, 0], sizes = [16, 32], strides = [1, 1]} : vector<16x128xf32> to vector<16x32xf32>
    %62 = arith.truncf %61 : vector<16x32xf32> to vector<16x32xbf16>
    %63 = vector.extract_strided_slice %58 {offsets = [0, 0], sizes = [16, 32], strides = [1, 1]} : vector<16x128xf32> to vector<16x32xf32>
    %64 = arith.truncf %63 : vector<16x32xf32> to vector<16x32xbf16>
    %cst_32 = arith.constant dense<0.000000e+00> : vector<16x16xf32>
    %65 = tpu.matmul %60, %62, %cst_32 {dimension_numbers = #tpu.dot_dimension_numbers<[1], [1], [0], [0], [0, 0, 1, 0], [], []>} : vector<16x32xbf16>, vector<16x32xbf16>, vector<16x16xf32> -> vector<16x16xf32>
    %cst_33 = arith.constant dense<0xFF800000> : vector<16xf32>
    %66 = vector.multi_reduction <maximumf>, %65, %cst_33 [1] : vector<16x16xf32> to vector<16xf32>
    %67 = vector.shape_cast %66 : vector<16xf32> to vector<16x1xf32>
    %68 = vector.broadcast %67 : vector<16x1xf32> to vector<16x16xf32>
    %69 = arith.subf %65, %68 : vector<16x16xf32>
    %70 = math.exp %69 : vector<16x16xf32>
    %cst_34 = arith.constant dense<0.000000e+00> : vector<16xf32>
    %71 = vector.multi_reduction <add>, %70, %cst_34 [1] : vector<16x16xf32> to vector<16xf32>
    %72 = vector.shape_cast %71 : vector<16xf32> to vector<16x1xf32>
    %73 = tpu.reciprocal %72 {approx = true} : vector<16x1xf32> -> vector<16x1xf32>
    %74 = vector.broadcast %73 : vector<16x1xf32> to vector<16x16xf32>
    %75 = arith.mulf %70, %74 : vector<16x16xf32>
    %76 = arith.truncf %75 : vector<16x16xf32> to vector<16x16xbf16>
    %cst_35 = arith.constant dense<0.000000e+00> : vector<16x32xf32>
    %77 = tpu.matmul %76, %64, %cst_35 {dimension_numbers = #tpu.dot_dimension_numbers<[1], [0], [0], [1], [0, 0, 1, 1], [], []>} : vector<16x16xbf16>, vector<16x32xbf16>, vector<16x32xf32> -> vector<16x32xf32>
    %78 = vector.extract_strided_slice %52 {offsets = [0, 32], sizes = [16, 32], strides = [1, 1]} : vector<16x128xf32> to vector<16x32xf32>
    %79 = arith.truncf %78 : vector<16x32xf32> to vector<16x32xbf16>
    %80 = vector.extract_strided_slice %55 {offsets = [0, 32], sizes = [16, 32], strides = [1, 1]} : vector<16x128xf32> to vector<16x32xf32>
    %81 = arith.truncf %80 : vector<16x32xf32> to vector<16x32xbf16>
    %82 = vector.extract_strided_slice %58 {offsets = [0, 32], sizes = [16, 32], strides = [1, 1]} : vector<16x128xf32> to vector<16x32xf32>
    %83 = arith.truncf %82 : vector<16x32xf32> to vector<16x32xbf16>
    %cst_36 = arith.constant dense<0.000000e+00> : vector<16x16xf32>
    %84 = tpu.matmul %79, %81, %cst_36 {dimension_numbers = #tpu.dot_dimension_numbers<[1], [1], [0], [0], [0, 0, 1, 0], [], []>} : vector<16x32xbf16>, vector<16x32xbf16>, vector<16x16xf32> -> vector<16x16xf32>
    %cst_37 = arith.constant dense<0xFF800000> : vector<16xf32>
    %85 = vector.multi_reduction <maximumf>, %84, %cst_37 [1] : vector<16x16xf32> to vector<16xf32>
    %86 = vector.shape_cast %85 : vector<16xf32> to vector<16x1xf32>
    %87 = vector.broadcast %86 : vector<16x1xf32> to vector<16x16xf32>
    %88 = arith.subf %84, %87 : vector<16x16xf32>
    %89 = math.exp %88 : vector<16x16xf32>
    %cst_38 = arith.constant dense<0.000000e+00> : vector<16xf32>
    %90 = vector.multi_reduction <add>, %89, %cst_38 [1] : vector<16x16xf32> to vector<16xf32>
    %91 = vector.shape_cast %90 : vector<16xf32> to vector<16x1xf32>
    %92 = tpu.reciprocal %91 {approx = true} : vector<16x1xf32> -> vector<16x1xf32>
    %93 = vector.broadcast %92 : vector<16x1xf32> to vector<16x16xf32>
    %94 = arith.mulf %89, %93 : vector<16x16xf32>
    %95 = arith.truncf %94 : vector<16x16xf32> to vector<16x16xbf16>
    %cst_39 = arith.constant dense<0.000000e+00> : vector<16x32xf32>
    %96 = tpu.matmul %95, %83, %cst_39 {dimension_numbers = #tpu.dot_dimension_numbers<[1], [0], [0], [1], [0, 0, 1, 1], [], []>} : vector<16x16xbf16>, vector<16x32xbf16>, vector<16x32xf32> -> vector<16x32xf32>
    %97 = vector.extract_strided_slice %52 {offsets = [0, 64], sizes = [16, 32], strides = [1, 1]} : vector<16x128xf32> to vector<16x32xf32>
    %98 = arith.truncf %97 : vector<16x32xf32> to vector<16x32xbf16>
    %99 = vector.extract_strided_slice %55 {offsets = [0, 64], sizes = [16, 32], strides = [1, 1]} : vector<16x128xf32> to vector<16x32xf32>
    %100 = arith.truncf %99 : vector<16x32xf32> to vector<16x32xbf16>
    %101 = vector.extract_strided_slice %58 {offsets = [0, 64], sizes = [16, 32], strides = [1, 1]} : vector<16x128xf32> to vector<16x32xf32>
    %102 = arith.truncf %101 : vector<16x32xf32> to vector<16x32xbf16>
    %cst_40 = arith.constant dense<0.000000e+00> : vector<16x16xf32>
    %103 = tpu.matmul %98, %100, %cst_40 {dimension_numbers = #tpu.dot_dimension_numbers<[1], [1], [0], [0], [0, 0, 1, 0], [], []>} : vector<16x32xbf16>, vector<16x32xbf16>, vector<16x16xf32> -> vector<16x16xf32>
    %cst_41 = arith.constant dense<0xFF800000> : vector<16xf32>
    %104 = vector.multi_reduction <maximumf>, %103, %cst_41 [1] : vector<16x16xf32> to vector<16xf32>
    %105 = vector.shape_cast %104 : vector<16xf32> to vector<16x1xf32>
    %106 = vector.broadcast %105 : vector<16x1xf32> to vector<16x16xf32>
    %107 = arith.subf %103, %106 : vector<16x16xf32>
    %108 = math.exp %107 : vector<16x16xf32>
    %cst_42 = arith.constant dense<0.000000e+00> : vector<16xf32>
    %109 = vector.multi_reduction <add>, %108, %cst_42 [1] : vector<16x16xf32> to vector<16xf32>
    %110 = vector.shape_cast %109 : vector<16xf32> to vector<16x1xf32>
    %111 = tpu.reciprocal %110 {approx = true} : vector<16x1xf32> -> vector<16x1xf32>
    %112 = vector.broadcast %111 : vector<16x1xf32> to vector<16x16xf32>
    %113 = arith.mulf %108, %112 : vector<16x16xf32>
    %114 = arith.truncf %113 : vector<16x16xf32> to vector<16x16xbf16>
    %cst_43 = arith.constant dense<0.000000e+00> : vector<16x32xf32>
    %115 = tpu.matmul %114, %102, %cst_43 {dimension_numbers = #tpu.dot_dimension_numbers<[1], [0], [0], [1], [0, 0, 1, 1], [], []>} : vector<16x16xbf16>, vector<16x32xbf16>, vector<16x32xf32> -> vector<16x32xf32>
    %116 = vector.extract_strided_slice %52 {offsets = [0, 96], sizes = [16, 32], strides = [1, 1]} : vector<16x128xf32> to vector<16x32xf32>
    %117 = arith.truncf %116 : vector<16x32xf32> to vector<16x32xbf16>
    %118 = vector.extract_strided_slice %55 {offsets = [0, 96], sizes = [16, 32], strides = [1, 1]} : vector<16x128xf32> to vector<16x32xf32>
    %119 = arith.truncf %118 : vector<16x32xf32> to vector<16x32xbf16>
    %120 = vector.extract_strided_slice %58 {offsets = [0, 96], sizes = [16, 32], strides = [1, 1]} : vector<16x128xf32> to vector<16x32xf32>
    %121 = arith.truncf %120 : vector<16x32xf32> to vector<16x32xbf16>
    %cst_44 = arith.constant dense<0.000000e+00> : vector<16x16xf32>
    %122 = tpu.matmul %117, %119, %cst_44 {dimension_numbers = #tpu.dot_dimension_numbers<[1], [1], [0], [0], [0, 0, 1, 0], [], []>} : vector<16x32xbf16>, vector<16x32xbf16>, vector<16x16xf32> -> vector<16x16xf32>
    %cst_45 = arith.constant dense<0xFF800000> : vector<16xf32>
    %123 = vector.multi_reduction <maximumf>, %122, %cst_45 [1] : vector<16x16xf32> to vector<16xf32>
    %124 = vector.shape_cast %123 : vector<16xf32> to vector<16x1xf32>
    %125 = vector.broadcast %124 : vector<16x1xf32> to vector<16x16xf32>
    %126 = arith.subf %122, %125 : vector<16x16xf32>
    %127 = math.exp %126 : vector<16x16xf32>
    %cst_46 = arith.constant dense<0.000000e+00> : vector<16xf32>
    %128 = vector.multi_reduction <add>, %127, %cst_46 [1] : vector<16x16xf32> to vector<16xf32>
    %129 = vector.shape_cast %128 : vector<16xf32> to vector<16x1xf32>
    %130 = tpu.reciprocal %129 {approx = true} : vector<16x1xf32> -> vector<16x1xf32>
    %131 = vector.broadcast %130 : vector<16x1xf32> to vector<16x16xf32>
    %132 = arith.mulf %127, %131 : vector<16x16xf32>
    %133 = arith.truncf %132 : vector<16x16xf32> to vector<16x16xbf16>
    %cst_47 = arith.constant dense<0.000000e+00> : vector<16x32xf32>
    %134 = tpu.matmul %133, %121, %cst_47 {dimension_numbers = #tpu.dot_dimension_numbers<[1], [0], [0], [1], [0, 0, 1, 1], [], []>} : vector<16x16xbf16>, vector<16x32xbf16>, vector<16x32xf32> -> vector<16x32xf32>
    %135 = tpu.concatenate %77, %96, %115, %134 in 1 : vector<16x32xf32>, vector<16x32xf32>, vector<16x32xf32>, vector<16x32xf32> -> vector<16x128xf32>
    %136 = arith.truncf %135 : vector<16x128xf32> to vector<16x128xbf16>
    %c0_48 = arith.constant 0 : index
    %c0_49 = arith.constant 0 : index
    %c0_50 = arith.constant 0 : index
    %137 = vector.load %arg6[%c0_48, %c0_49, %c0_50] : memref<1x128x128xbf16, #tpu.memory_space<vmem>>, vector<1x128x128xbf16>
    %138 = vector.shape_cast %137 : vector<1x128x128xbf16> to vector<128x128xbf16>
    %cst_51 = arith.constant dense<0.000000e+00> : vector<16x128xf32>
    %139 = tpu.matmul %136, %138, %cst_51 {dimension_numbers = #tpu.dot_dimension_numbers<[1], [0], [0], [1], [0, 0, 1, 1], [], []>} : vector<16x128xbf16>, vector<128x128xbf16>, vector<16x128xf32> -> vector<16x128xf32>
    %140 = vector.broadcast %19 : vector<1x128xf32> to vector<16x128xf32>
    %141 = arith.addf %139, %140 : vector<16x128xf32>
    %142 = arith.addf %141, %45 : vector<16x128xf32>
    %cst_52 = arith.constant dense<0.000000e+00> : vector<16xf32>
    %143 = vector.multi_reduction <add>, %142, %cst_52 [1] : vector<16x128xf32> to vector<16xf32>
    %144 = vector.shape_cast %143 : vector<16xf32> to vector<16x1xf32>
    %cst_53 = arith.constant 1.280000e+02 : f32
    %145 = vector.broadcast %cst_53 : f32 to vector<16x1xf32>
    %146 = arith.divf %144, %145 : vector<16x1xf32>
    %147 = vector.broadcast %146 : vector<16x1xf32> to vector<16x128xf32>
    %148 = arith.subf %142, %147 : vector<16x128xf32>
    %149 = arith.mulf %148, %148 : vector<16x128xf32>
    %cst_54 = arith.constant dense<0.000000e+00> : vector<16xf32>
    %150 = vector.multi_reduction <add>, %149, %cst_54 [1] : vector<16x128xf32> to vector<16xf32>
    %151 = vector.shape_cast %150 : vector<16xf32> to vector<16x1xf32>
    %cst_55 = arith.constant 1.280000e+02 : f32
    %152 = vector.broadcast %cst_55 : f32 to vector<16x1xf32>
    %153 = arith.divf %151, %152 : vector<16x1xf32>
    %154 = vector.broadcast %146 : vector<16x1xf32> to vector<16x128xf32>
    %155 = arith.subf %142, %154 : vector<16x128xf32>
    %cst_56 = arith.constant 9.99999997E-7 : f32
    %156 = vector.broadcast %cst_56 : f32 to vector<16x1xf32>
    %157 = arith.addf %153, %156 : vector<16x1xf32>
    %158 = math.rsqrt %157 : vector<16x1xf32>
    %159 = vector.broadcast %158 : vector<16x1xf32> to vector<16x128xf32>
    %160 = arith.mulf %155, %159 : vector<16x128xf32>
    %161 = vector.broadcast %9 : vector<1x128xf32> to vector<16x128xf32>
    %162 = arith.mulf %160, %161 : vector<16x128xf32>
    %163 = vector.broadcast %11 : vector<1x128xf32> to vector<16x128xf32>
    %164 = arith.addf %162, %163 : vector<16x128xf32>
    %165 = arith.truncf %164 : vector<16x128xf32> to vector<16x128xbf16>
    %c0_57 = arith.constant 0 : index
    %c0_58 = arith.constant 0 : index
    %c0_59 = arith.constant 0 : index
    %166 = vector.load %arg7[%c0_57, %c0_58, %c0_59] : memref<1x128x256xbf16, #tpu.memory_space<vmem>>, vector<1x128x256xbf16>
    %167 = vector.shape_cast %166 : vector<1x128x256xbf16> to vector<128x256xbf16>
    %cst_60 = arith.constant dense<0.000000e+00> : vector<16x256xf32>
    %168 = tpu.matmul %165, %167, %cst_60 {dimension_numbers = #tpu.dot_dimension_numbers<[1], [0], [0], [1], [0, 0, 1, 1], [], []>} : vector<16x128xbf16>, vector<128x256xbf16>, vector<16x256xf32> -> vector<16x256xf32>
    %169 = vector.broadcast %23 : vector<1x256xf32> to vector<16x256xf32>
    %170 = arith.addf %168, %169 : vector<16x256xf32>
    %cst_61 = arith.constant 5.000000e-01 : f32
    %171 = vector.broadcast %cst_61 : f32 to vector<16x256xf32>
    %172 = arith.mulf %171, %170 : vector<16x256xf32>
    %cst_62 = arith.constant 4.471500e-02 : f32
    %173 = vector.broadcast %cst_62 : f32 to vector<16x256xf32>
    %174 = arith.mulf %173, %170 : vector<16x256xf32>
    %175 = arith.mulf %174, %170 : vector<16x256xf32>
    %176 = arith.mulf %175, %170 : vector<16x256xf32>
    %177 = arith.addf %170, %176 : vector<16x256xf32>
    %cst_63 = arith.constant 0.797884583 : f32
    %178 = vector.broadcast %cst_63 : f32 to vector<16x256xf32>
    %179 = arith.mulf %178, %177 : vector<16x256xf32>
    %180 = math.tanh %179 : vector<16x256xf32>
    %cst_64 = arith.constant 1.000000e+00 : f32
    %181 = vector.broadcast %cst_64 : f32 to vector<16x256xf32>
    %182 = arith.addf %181, %180 : vector<16x256xf32>
    %183 = arith.mulf %172, %182 : vector<16x256xf32>
    %184 = arith.truncf %183 : vector<16x256xf32> to vector<16x256xbf16>
    %c0_65 = arith.constant 0 : index
    %c0_66 = arith.constant 0 : index
    %c0_67 = arith.constant 0 : index
    %185 = vector.load %arg8[%c0_65, %c0_66, %c0_67] : memref<1x256x128xbf16, #tpu.memory_space<vmem>>, vector<1x256x128xbf16>
    %186 = vector.shape_cast %185 : vector<1x256x128xbf16> to vector<256x128xbf16>
    %cst_68 = arith.constant dense<0.000000e+00> : vector<16x128xf32>
    %187 = tpu.matmul %184, %186, %cst_68 {dimension_numbers = #tpu.dot_dimension_numbers<[1], [0], [0], [1], [0, 0, 1, 1], [], []>} : vector<16x256xbf16>, vector<256x128xbf16>, vector<16x128xf32> -> vector<16x128xf32>
    %188 = vector.broadcast %21 : vector<1x128xf32> to vector<16x128xf32>
    %189 = arith.addf %187, %188 : vector<16x128xf32>
    %190 = arith.addf %189, %164 : vector<16x128xf32>
    %c0_69 = arith.constant 0 : index
    %c0_70 = arith.constant 0 : index
    %191 = vector.load %arg11[%c0_69, %c0_70] : memref<16x128xf32, #tpu.memory_space<vmem>>, vector<16x128xf32>
    tpu.vector_store %arg11[%c0_69, %c0_70], %190 {strides = array<i32>} : memref<16x128xf32, #tpu.memory_space<vmem>>, vector<16x128xf32>,
    %c1_i32 = arith.constant 1 : i32
    %192 = arith.cmpi eq, %arg1, %c1_i32 : i32
    %193 = arith.extui %192 : i1 to i32
    %c0_i32_71 = arith.constant 0 : i32
    %194 = arith.cmpi ne, %193, %c0_i32_71 : i32
    scf.if %194 {
      %c0_72 = arith.constant 0 : index
      %c0_73 = arith.constant 0 : index
      %195 = vector.load %arg9[%c0_72, %c0_73] : memref<1x128xf32, #tpu.memory_space<vmem>>, vector<1x128xf32>
      %c0_74 = arith.constant 0 : index
      %c0_75 = arith.constant 0 : index
      %196 = vector.load %arg10[%c0_74, %c0_75] : memref<1x128xf32, #tpu.memory_space<vmem>>, vector<1x128xf32>
      %cst_76 = arith.constant dense<0.000000e+00> : vector<16xf32>
      %197 = vector.multi_reduction <add>, %190, %cst_76 [1] : vector<16x128xf32> to vector<16xf32>
      %198 = vector.shape_cast %197 : vector<16xf32> to vector<16x1xf32>
      %cst_77 = arith.constant 1.280000e+02 : f32
      %199 = vector.broadcast %cst_77 : f32 to vector<16x1xf32>
      %200 = arith.divf %198, %199 : vector<16x1xf32>
      %201 = vector.broadcast %200 : vector<16x1xf32> to vector<16x128xf32>
      %202 = arith.subf %190, %201 : vector<16x128xf32>
      %203 = arith.mulf %202, %202 : vector<16x128xf32>
      %cst_78 = arith.constant dense<0.000000e+00> : vector<16xf32>
      %204 = vector.multi_reduction <add>, %203, %cst_78 [1] : vector<16x128xf32> to vector<16xf32>
      %205 = vector.shape_cast %204 : vector<16xf32> to vector<16x1xf32>
      %cst_79 = arith.constant 1.280000e+02 : f32
      %206 = vector.broadcast %cst_79 : f32 to vector<16x1xf32>
      %207 = arith.divf %205, %206 : vector<16x1xf32>
      %208 = vector.broadcast %200 : vector<16x1xf32> to vector<16x128xf32>
      %209 = arith.subf %190, %208 : vector<16x128xf32>
      %cst_80 = arith.constant 9.99999997E-7 : f32
      %210 = vector.broadcast %cst_80 : f32 to vector<16x1xf32>
      %211 = arith.addf %207, %210 : vector<16x1xf32>
      %212 = math.rsqrt %211 : vector<16x1xf32>
      %213 = vector.broadcast %212 : vector<16x1xf32> to vector<16x128xf32>
      %214 = arith.mulf %209, %213 : vector<16x128xf32>
      %215 = vector.broadcast %195 : vector<1x128xf32> to vector<16x128xf32>
      %216 = arith.mulf %214, %215 : vector<16x128xf32>
      %217 = vector.broadcast %196 : vector<1x128xf32> to vector<16x128xf32>
      %218 = arith.addf %216, %217 : vector<16x128xf32>
      %c0_81 = arith.constant 0 : index
      %c0_82 = arith.constant 0 : index
      %219 = vector.load %arg11[%c0_81, %c0_82] : memref<16x128xf32, #tpu.memory_space<vmem>>, vector<16x128xf32>
      tpu.vector_store %arg11[%c0_81, %c0_82], %218 {strides = array<i32>} : memref<16x128xf32, #tpu.memory_space<vmem>>, vector<16x128xf32>,
    } else {
    }
    return
  }
  func.func @transform_0(%arg0: i32, %arg1: i32) -> (i32, i32) {
    %c0_i32 = arith.constant 0 : i32
    %c0_i32_0 = arith.constant 0 : i32
    return %arg0, %c0_i32 : i32, i32
  }
  func.func @transform_1(%arg0: i32, %arg1: i32) -> (i32, i32, i32) {
    %c0_i32 = arith.constant 0 : i32
    %c0_i32_0 = arith.constant 0 : i32
    %c0_i32_1 = arith.constant 0 : i32
    return %arg1, %c0_i32, %c0_i32_0 : i32, i32, i32
  }
  func.func @transform_2(%arg0: i32, %arg1: i32) -> (i32, i32, i32) {
    %c0_i32 = arith.constant 0 : i32
    %c0_i32_0 = arith.constant 0 : i32
    %c0_i32_1 = arith.constant 0 : i32
    return %arg1, %c0_i32, %c0_i32_0 : i32, i32, i32
  }
  func.func @transform_3(%arg0: i32, %arg1: i32) -> (i32, i32, i32) {
    %c0_i32 = arith.constant 0 : i32
    %c0_i32_0 = arith.constant 0 : i32
    %c0_i32_1 = arith.constant 0 : i32
    return %arg1, %c0_i32, %c0_i32_0 : i32, i32, i32
  }
  func.func @transform_4(%arg0: i32, %arg1: i32) -> (i32, i32, i32) {
    %c0_i32 = arith.constant 0 : i32
    %c0_i32_0 = arith.constant 0 : i32
    %c0_i32_1 = arith.constant 0 : i32
    return %arg1, %c0_i32, %c0_i32_0 : i32, i32, i32
  }
  func.func @transform_5(%arg0: i32, %arg1: i32) -> (i32, i32, i32) {
    %c0_i32 = arith.constant 0 : i32
    %c0_i32_0 = arith.constant 0 : i32
    %c0_i32_1 = arith.constant 0 : i32
    return %arg1, %c0_i32, %c0_i32_0 : i32, i32, i32
  }
  func.func @transform_6(%arg0: i32, %arg1: i32) -> (i32, i32, i32) {
    %c0_i32 = arith.constant 0 : i32
    %c0_i32_0 = arith.constant 0 : i32
    %c0_i32_1 = arith.constant 0 : i32
    return %arg1, %c0_i32, %c0_i32_0 : i32, i32, i32
  }
  func.func @transform_7(%arg0: i32, %arg1: i32) -> (i32, i32) {
    %c0_i32 = arith.constant 0 : i32
    %c0_i32_0 = arith.constant 0 : i32
    %c0_i32_1 = arith.constant 0 : i32
    return %c0_i32, %c0_i32_0 : i32, i32
  }
  func.func @transform_8(%arg0: i32, %arg1: i32) -> (i32, i32) {
    %c0_i32 = arith.constant 0 : i32
    %c0_i32_0 = arith.constant 0 : i32
    %c0_i32_1 = arith.constant 0 : i32
    return %c0_i32, %c0_i32_0 : i32, i32
  }
  func.func @transform_9(%arg0: i32, %arg1: i32) -> (i32, i32) {
    %c0_i32 = arith.constant 0 : i32
    %c0_i32_0 = arith.constant 0 : i32
    return %arg0, %c0_i32 : i32, i32
  }
}

</mosaic_0001>

<bundles_post_ra>
// kernel: siglip_vision_forward.2
= control target key start
LH: loop header
LB: loop body
LE: loop exit
PB: predicated region body
PF: predicated region fallthrough
CT: control target
= control target key end

     0   :  { %s469_s15 = smov 0   ;;  %s554_s0 = inlined_call_operand.vmem [shape: f32[32,128], index: 0, kind: input, shape index: {}]   ;;  %s555_s1 = inlined_call_operand.vmem [shape: f32[128,128], index: 1, kind: input, shape index: {}]   ;;  %s556_s2 = inlined_call_operand.vmem [shape: f32[1,128], index: 2, kind: input, shape index: {}]   ;;  %s557_s3 = inlined_call_operand.vmem [shape: f32[16,128], index: 3, kind: input, shape index: {}]   ;;  %s558_s4 = inlined_call_operand.vmem [shape: f32[32,128], index: 4, kind: output, shape index: {}]  }
   0x1 LB: > { %s363_s16 = sadd.s32 4294967295, %s442_s15   ;;  %p367_p0 = scmp.ge.s32.totalorder %s442_s15, 1  ;;  %s442_s15 = sphi %s469_s15, %s14_s15  }
   0x2   : > { %p163_p1 = scmp.lt.s32.totalorder %s442_s15, 3 }
   0x4   : > { %p164_p2 = pnand %p367_p0, %p163_p1 }
   0x5   : > { %s368_s21 = sshll.u32 (!%p164_p2), %s363_s16, 1 }
   0x6   : > { %167 = sbr.rel (%p164_p2) target bundleno = 244 (0xf4), region = 36  ;;  %p190_p3 = scmp.lt.s32.totalorder (!%p164_p2), %s368_s21, 3 }
   0xb   : > { %v218_v0 = vld [vmem:[%s555_s1 + $0x78] sm:$0xff]  ;;  %v217_v1 = vld [vmem:[%s555_s1 + $0x70] sm:$0xff]  ;;  %v216_v2 = vld [vmem:[%s555_s1 + $0x68] sm:$0xff]  ;;  %s560_s21 = smov (!%p190_p3, %s368_s21), 3 }
   0xc   : > { %393 = vmatprep.subr.mxu0 %v218_v0  ;;  %v215_v3 = vld [vmem:[%s555_s1 + $0x60] sm:$0xff]  ;;  %s369_s26 = sshll.u32 %s560_s21, 3  ;;  %v214_v4 = vld [vmem:[%s555_s1 + $0x58] sm:$0xff]  ;;  %v213_v6 = vld [vmem:[%s555_s1 + $0x50] sm:$0xff] }
   0xd   : > { %394 = vmatpush3.msra.mxu0 %v218_v0  ;;  %s500_s5 = scalar_lea.vmem %s554_s0, %s369_s26  ;;  %v212_v7 = vld [vmem:[%s555_s1 + $0x48] sm:$0xff]  ;;  %v211_v8 = vld [vmem:[%s555_s1 + $0x40] sm:$0xff]  ;;  %v210_v9 = vld [vmem:[%s555_s1 + $0x38] sm:$0xff]  ;;  %s199_s13 = scalar_lea.vmem %s558_s4, %s369_s26 }
   0xe   : > { %395 = vmatprep.subr.mxu0 %v217_v1  ;;  %v201_v5 = vld [vmem:[%s500_s5] sm:$0xff]  ;;  %v209_v10 = vld [vmem:[%s555_s1 + $0x30] sm:$0xff]  ;;  %v208_v11 = vld [vmem:[%s555_s1 + $0x28] sm:$0xff] }
   0xf   : > { %396 = vmatpush3.msra.mxu0 %v217_v1  ;;  %425 = vmatprep.mubr.f32.mxu0 %v201_v5  ;;  %v207_v12 = vld [vmem:[%s555_s1 + $0x20] sm:$0xff]  ;;  %v206_v13 = vld [vmem:[%s555_s1 + $0x18] sm:$0xff]  ;;  %v205_v14 = vld [vmem:[%s555_s1 + $0x10] sm:$0xff] }
  0x10   : > { %397 = vmatprep.subr.mxu0 %v216_v2  ;;  %v204_v15 = vld [vmem:[%s555_s1 + $0x8] sm:$0xff]  ;;  %v203_v16 = vld [vmem:[%s555_s1] sm:$0xff] }
  0x11   : > { %398 = vmatpush3.msra.mxu0 %v216_v2  ;;  %v202_v17 = vld [vmem:[%s500_s5 + $0x8] sm:$0xff]  ;;  %v372_v18 = vld [vmem:[%s556_s2] ss:$0 sm:$0xff] }
  0x12   : > { %399 = vmatprep.subr.mxu0 %v215_v3  ;;  %v301_v22 = vld [vmem:[%s557_s3] sm:$0xff]  ;;  %v302_v23 = vld [vmem:[%s557_s3 + $0x8] sm:$0xff] }
  0x13   : > { %400 = vmatpush3.msra.mxu0 %v215_v3 }
  0x14   : > { %401 = vmatprep.subr.mxu0 %v214_v4 }
  0x15   : > { %402 = vmatpush3.msra.mxu0 %v214_v4 }
  0x16   : > { %403 = vmatprep.subr.mxu0 %v213_v6 }
  0x17   : > { %404 = vmatpush3.msra.mxu0 %v213_v6 }
  0x18   : > { %405 = vmatprep.subr.mxu0 %v212_v7 }
  0x19   : > { %406 = vmatpush3.msra.mxu0 %v212_v7 }
  0x1a   : > { %407 = vmatprep.subr.mxu0 %v211_v8 }
  0x1b   : > { %408 = vmatpush3.msra.mxu0 %v211_v8 }
  0x1c   : > { %409 = vmatprep.subr.mxu0 %v210_v9 }
  0x1d   : > { %410 = vmatpush3.msra.mxu0 %v210_v9 }
  0x1e   : > { %411 = vmatprep.subr.mxu0 %v209_v10 }
  0x1f   : > { %412 = vmatpush3.msra.mxu0 %v209_v10 }
  0x20   : > { %413 = vmatprep.subr.mxu0 %v208_v11 }
  0x21   : > { %414 = vmatpush3.msra.mxu0 %v208_v11 }
  0x22   : > { %415 = vmatprep.subr.mxu0 %v207_v12 }
  0x23   : > { %416 = vmatpush3.msra.mxu0 %v207_v12 }
  0x24   : > { %417 = vmatprep.subr.mxu0 %v206_v13 }
  0x25   : > { %418 = vmatpush3.msra.mxu0 %v206_v13 }
  0x26   : > { %419 = vmatprep.subr.mxu0 %v205_v14 }
  0x27   : > { %420 = vmatpush3.msra.mxu0 %v205_v14 }
  0x28   : > { %421 = vmatprep.subr.mxu0 %v204_v15 }
  0x29   : > { %422 = vmatpush3.msra.mxu0 %v204_v15 }
  0x2a   : > { %423 = vmatprep.subr.mxu0 %v203_v16 }
  0x2b   : > { %424 = vmatpush3.msra.mxu0 %v203_v16 }
  0x2c   : > { %426 = vmatmul.mubr.f32.vlgmr.msra.gmra.mxu0 %v202_v17 }
  0xec   : > { %v427_v19 = vpop.f32.mrf.mxu0 }
  0xed   : > { %v298_v20 = vadd.f32 %v427_v19, %v372_v18 }
  0xee   : > { %v292_v21 = vpop.f32.mrf.mxu0 }
  0xef   : > { %v293_v24 = vadd.f32 %v372_v18, %v292_v21  ;;  %v304_v26 = vadd.f32 %v302_v23, %v298_v20 }
  0xf1   : > { %v303_v25 = vadd.f32 %v301_v22, %v293_v24  ;;  %306 = vst [vmem:[%s199_s13 + $0x8] sm:$0xff] %v304_v26 }
  0xf3   : > { %305 = vst [vmem:[%s199_s13] sm:$0xff] %v303_v25 }
  0xf4 PF: > { %s14_s15 = sadd.s32 1, %s442_s15  }
  0xf5   : > { %p11_p4 = scmp.ge.s32.totalorder %s14_s15, 4  }
  0xf7   :  { %13 = sbr.rel (!%p11_p4) target bundleno = 1 (0x1), region = 66 }

// kernel: siglip_vision_forward.3
= control target key start
LH: loop header
LB: loop body
LE: loop exit
PB: predicated region body
PF: predicated region fallthrough
CT: control target
= control target key end

     0   :  { %s3041_s0 = inlined_call_operand.vmem [shape: f32[32,128], index: 0, kind: input, shape index: {}]   ;;  %s3042_s1 = inlined_call_operand.vmem [shape: f32[2,9,128], index: 1, kind: input, shape index: {}]   ;;  %s3043_s2 = inlined_call_operand.vmem [shape: f32[2,1,256], index: 2, kind: input, shape index: {}]   ;;  %s3044_s3 = inlined_call_operand.vmem [shape: bf16[2,128,384], index: 3, kind: input, shape index: {}]   ;;  %s3045_s4 = inlined_call_operand.vmem [shape: bf16[2,128,128], index: 4, kind: input, shape index: {}]   ;;  %s3046_s5 = inlined_call_operand.vmem [shape: bf16[2,128,256], index: 5, kind: input, shape index: {}]   ;;  %s3047_s6 = inlined_call_operand.vmem [shape: bf16[2,256,128], index: 6, kind: input, shape index: {}]   ;;  %s3048_s7 = inlined_call_operand.vmem [shape: f32[1,128], index: 7, kind: input, shape index: {}]   ;;  %s3049_s8 = inlined_call_operand.vmem [shape: f32[1,128], index: 8, kind: input, shape index: {}]   ;;  %s3050_s9 = inlined_call_operand.hbm [shape: f32[32,128], index: 9, kind: output, shape index: {}]  }
   0x1   :  { %3063 = sst [smem:[#allocation15_spill]] %s3041_s0 }
   0x2   :  { %3064 = sst [smem:[#allocation16_spill]] %s3050_s9 }
   0x3   :  { %14 = vsyncpa [#allocation3], 0 }
   0x4   :  { %16 = vsyncpa [#allocation3 + $0x1], 0  ;;  %s2653_s30 = smov 0   ;;  %s2655_s10 = smov 0  }
   0x5   :  { %s2657_s11 = smov 0   ;;  %s2659_s12 = smov 0  }
   0x6   :  { %s2661_s13 = smov 0   ;;  %s2663_s14 = smov 0  }
   0x7   :  { %s2665_s15 = smov 0   ;;  %s2667_s16 = smov 0  }
   0x8 LB: > { %3065 = sst [smem:[#allocation5_spill]] %s2564_s30  ;;  %s2016_s17 = sadd.s32 4294967295, %s2592_s16   ;;  %s2592_s16 = sphi %s2667_s16, %s22_s16   ;;  %s2588_s15 = sphi %s2665_s15, %s3089_s15   ;;  %s2584_s14 = sphi %s2663_s14, %s3088_s14   ;;  %s2580_s13 = sphi %s2661_s13, %s3087_s13   ;;  %s2576_s12 = sphi %s2659_s12, %s3086_s12   ;;  %s2572_s11 = sphi %s2657_s11, %s3085_s11   ;;  %s2568_s10 = sphi %s2655_s10, %s3091_s10   ;;  %s2564_s30 = sphi %s2653_s30, %s3090_s30  }
   0x9   : > { %3066 = sst [smem:[#allocation6_spill]] %s2572_s11  ;;  %s2017_s18 = sadd.s32 4294967294, %s2592_s16  }
   0xa   : > { %3067 = sst [smem:[#allocation7_spill]] %s2584_s14  ;;  %s31_s19 = sadd.s32 1, %s2584_s14 }
   0xb   : > { %3068 = sst [smem:[#allocation8_spill]] %s2588_s15  ;;  %p32_p0 = scmp.ge.s32.totalorder %s31_s19, 2 }
   0xc   : > { %3069 = sst [smem:[#allocation9_spill]] %s2592_s16  ;;  %s34_s20 = sadd.s32 1, %s2588_s15 }
   0xd   : > { %p275_p1 = scmp.ne.s32.totalorder %s2572_s11, %s2568_s10  ;;  %p276_p2 = scmp.eq.s32.totalorder %s2016_s17, 3 }
   0xe   : > { %s3093_s19 = smov (%p32_p0, %s31_s19), 0  ;;  %s3095_s20 = smov (!%p32_p0, %s34_s20), %s2588_s15 }
   0xf   : > { %3070 = sst [smem:[#allocation10_spill]] %s3093_s19  ;;  %p2702_p3 = por %p276_p2, %p275_p1 }
  0x10   : > { %p281_p4 = scmp.ne.s32.totalorder %s2568_s10, %s2564_s30  ;;  %p36_p5 = scmp.ge.s32.totalorder %s3095_s20, 2 }
  0x11   : > { %s3071_s21 = scalar_select %p2702_p3, 1, 0 }
  0x12   : > { %p282_p6 = scmp.eq.s32.totalorder %s2017_s18, 3  ;;  %p2020_p7 = scmp.ge.s32.totalorder %s2592_s16, 1 }
  0x13   : > { %3072 = sst [smem:[#allocation11_spill]] %s3071_s21  ;;  %p362_p8 = scmp.lt.s32.totalorder %s2592_s16, 5 }
  0x14   : > { %s3097_s20 = smov (%p36_p5, %s3095_s20), 0  ;;  %p2712_p9 = por %p282_p6, %p281_p4 }
  0x15   : > { %3073 = sst [smem:[#allocation12_spill]] %s3097_s20  ;;  %p363_p10 = pnand %p2020_p7, %p362_p8 }
  0x16   : > { %s3074_s22 = scalar_select %p2712_p9, 1, 0 }
  0x17   : > { %s262_s23 = ssub.s32 %s2588_s15, %s3097_s20  ;;  %s265_s24 = sadd.s32 1, %s2572_s11 }
  0x18   : > { %3075 = sst [smem:[#allocation13_spill]] %s3074_s22  ;;  %p263_p11 = scmp.eq.s32.totalorder %s262_s23, 0 }
  0x19   : > { %366 = sbr.rel (%p363_p10) target bundleno = 3238 (0xca6), region = 56  ;;  %s3056_s26 = sand.u32 (!%p363_p10), 1, %s2568_s10  }
  0x1a   : > { %s2720_s25 = scalar_select %p263_p11, %s2572_s11, %s265_s24  }
  0x1b   : > { %s2022_s27 = sshll.u32 (!%p363_p10), %s2580_s13, 1  ;;  %s2021_s28 = sshll.u32 (!%p363_p10), %s3056_s26, 4 }
  0x1c   : > { %3076 = sst [smem:[#allocation14_spill]] %s2720_s25  ;;  %p428_p12 = scmp.lt.s32.totalorder (!%p363_p10), %s2022_s27, 3 }
  0x1d   : > { %p433_p13 = scmp.lt.s32.totalorder (!%p363_p10), %s2576_s12, 1  ;;  %s3077_s0 = sld [smem:[#allocation15_spill]] (!%p363_p10) }
  0x1e   : > { %s3099_s27 = smov (!%p428_p12, %s2022_s27), 3  ;;  %p2034_p0 = scmp.ne.s32.totalorder %s2576_s12, 0 }
  0x1f   : > { %s434_s29 = scalar_select %p433_p13, %s2576_s12, 1 }
  0x20   : > { %s2023_s17 = sshll.u32 %s3099_s27, 3 }
  0x21   : > { %s2124_s24 = sshll.u32 %s434_s29, 4  ;;  %s2026_s25 = sshll.u32 %s434_s29, 1 }
  0x22   : > { %s2734_s14 = scalar_lea.vmem %s3042_s1, %s2124_s24  ;;  %s2739_s26 = scalar_lea.vmem %s3043_s2, %s2026_s25 }
  0x23   : > { %s431_s23 = scalar_lea.vmem %s3077_s0, %s2023_s17  ;;  %s2273_s30 = smul.u32 192, %s434_s29 }
  0x24   : > { %s2125_s16 = sshll.u32 %s434_s29, 6  ;;  %s2126_s9 = sshll.u32 %s434_s29, 7 }
  0x25   : > { %s2744_s20 = scalar_lea.vmem %s3044_s3, %s2273_s30  ;;  %s2749_s15 = scalar_lea.vmem %s3045_s4, %s2125_s16 }
  0x26   : > { %s2754_s0 = scalar_lea.vmem %s3046_s5, %s2126_s9  ;;  %s2759_s25 = scalar_lea.vmem %s3047_s6, %s2126_s9 }
  0x27   : > { %s2761_s29 = scalar_lea.vmem [#allocation2], %s2021_s28  ;;  %467 = sbr.rel (%p2034_p0) target bundleno = 46 (0x2e), region = 60 }
  0x2c   : > { %v468_v0 = vld [vmem:[%s431_s23] sm:$0xff]  ;;  %v469_v1 = vld [vmem:[%s431_s23 + $0x8] sm:$0xff] }
  0x2d   : > { %470 = vst [vmem:[%s2761_s29] sm:$0xff] %v468_v0  ;;  %471 = vst [vmem:[%s2761_s29 + $0x8] sm:$0xff] %v469_v1 }
  0x2e PF: > { %v2368_v4 = vld [vmem:[%s2744_s20 + $0xac] ss:$12 sps:$4 sm:$0xff]   ;;  %v2370_v5 = vld [vmem:[%s2744_s20 + $0xa8] ss:$12 sps:$4 sm:$0xff]   ;;  %v2594_v6 = vmov 0.0   ;;  %v2595_v29 = vmov 0  }
  0x2f   : > { %2185 = vmatprep.subr.bf16.mxu1 %v2594_v6  ;;  %v2371_v7 = vld [vmem:[%s2744_s20 + $0xb0] ss:$12 sps:$4 sm:$0xff]   ;;  %680 = vmatprep.subr.bf16.mxu0 %v2368_v4  ;;  %v2372_v16 = vld [vmem:[%s2744_s20 + $0x94] ss:$12 sps:$4 sm:$0xff]   ;;  %v2375_v18 = vld [vmem:[%s2744_s20 + $0x98] ss:$12 sps:$4 sm:$0xff]  }
  0x30   : > { %681 = vmatpush1.bf16.msra.mxu0 %v2370_v5  ;;  %2186 = vmatpush3.bf16.msra.mxu1 %v2371_v7  ;;  %v2374_v17 = vld [vmem:[%s2744_s20 + $0x90] ss:$12 sps:$4 sm:$0xff]   ;;  %v2378_v20 = vld [vmem:[%s2744_s20 + $0x78] ss:$12 sps:$4 sm:$0xff]   ;;  %v2379_v21 = vld [vmem:[%s2744_s20 + $0x80] ss:$12 sps:$4 sm:$0xff]  }
  0x31   : > { %2187 = vmatprep.subr.bf16.mxu1 %v2594_v6  ;;  %682 = vmatprep.subr.bf16.mxu0 %v2372_v16  ;;  %v2376_v19 = vld [vmem:[%s2744_s20 + $0x7c] ss:$12 sps:$4 sm:$0xff]   ;;  %v2380_v22 = vld [vmem:[%s2744_s20 + $0x64] ss:$12 sps:$4 sm:$0xff]   ;;  %v2382_v23 = vld [vmem:[%s2744_s20 + $0x60] ss:$12 sps:$4 sm:$0xff]  }
  0x32   : > { %v2383_v24 = vld [vmem:[%s2744_s20 + $0x68] ss:$12 sps:$4 sm:$0xff]   ;;  %v2384_v25 = vld [vmem:[%s2744_s20 + $0x4c] ss:$12 sps:$4 sm:$0xff]   ;;  %v2387_v27 = vld [vmem:[%s2744_s20 + $0x50] ss:$12 sps:$4 sm:$0xff]   ;;  %712 = vmatprep.mubr.bf16.mxu0 %v2595_v29 }
  0x33   : > { %v2386_v26 = vld [vmem:[%s2744_s20 + $0x48] ss:$12 sps:$4 sm:$0xff]   ;;  %vm2596_vm0 = vmmov 0   ;;  %v2390_v30 = vld [vmem:[%s2744_s20 + $0x30] ss:$12 sps:$4 sm:$0xff]   ;;  %vm785_vm1 = vcmask 261120  }
  0x34   : > { %v472_v2 = vld [vmem:[%s2761_s29] sm:$0xff]  ;;  %v473_v3 = vld [vmem:[%s2761_s29 + $0x8] sm:$0xff]  ;;  %683 = vmatpush1.bf16.msra.mxu0 %v2374_v17  ;;  %2188 = vmatpush3.bf16.msra.mxu1 %v2375_v18  ;;  %vm833_vm2 = vcmask 130048   ;;  %s2597_s9 = smov 96   ;;  %s2598_s30 = smov 64   ;;  %vm1293_vm3 = vcmask 523264  }
  0x35   : > { %484 = vadd.xlane.f32.xlu0 %v472_v2  ;;  %2189 = vmatprep.subr.bf16.mxu1 %v2594_v6  ;;  %v2388_v28 = vld [vmem:[%s2744_s20 + $0x34] ss:$12 sps:$4 sm:$0xff]   ;;  %v2391_v31 = vld [vmem:[%s2744_s20 + $0x38] ss:$12 sps:$4 sm:$0xff]   ;;  %v2392_v32 = vld [vmem:[%s2744_s20 + $0x1c] ss:$12 sps:$4 sm:$0xff]  }
  0x36   : > { %684 = vmatprep.subr.bf16.mxu0 %v2376_v19  ;;  %2201 = vmatprep.mubr.msk.bf16.mxu1 %vm2596_vm0, %v2594_v6  ;;  %v2394_v33 = vld [vmem:[%s2744_s20 + $0x18] ss:$12 sps:$4 sm:$0xff]   ;;  %v2395_v34 = vld [vmem:[%s2744_s20 + $0x20] ss:$12 sps:$4 sm:$0xff]   ;;  %v2399_v37 = vld [vmem:[%s2744_s20 + $0x8] ss:$12 sps:$4 sm:$0xff]  }
  0x37   : > { %v2396_v35 = vld [vmem:[%s2744_s20 + $0x4] ss:$12 sps:$4 sm:$0xff]   ;;  %v2398_v36 = vld [vmem:[%s2744_s20] ss:$12 sps:$4 sm:$0xff]   ;;  %s2599_s16 = smov 32   ;;  %vm1296_vm4 = vcmask 785408  }
  0x38   : > { %685 = vmatpush1.bf16.msra.mxu0 %v2378_v20  ;;  %2190 = vmatpush3.bf16.msra.mxu1 %v2379_v21  ;;  %v2035_v46 = vld [vmem:[%s2734_s14] ss:$0 sm:$0xff]  ;;  %v2036_v50 = vld [vmem:[%s2734_s14 + $0x1] ss:$0 sm:$0xff]  ;;  %v2062_v59 = vld [vmem:[%s2734_s14 + $0x5] ss:$0 sm:$0xff] }
  0x39   : > { %486 = vadd.xlane.f32.xlu0 %v473_v3  ;;  %2191 = vmatprep.subr.bf16.mxu1 %v2594_v6  ;;  %v2061_v4 = vld [vmem:[%s2734_s14 + $0x4] ss:$0 sm:$0xff]  ;;  %v2063_v5 = vld [vmem:[%s2734_s14 + $0x6] ss:$0 sm:$0xff]  ;;  %p2116_p1 = scmp.ne.s32.totalorder %s2576_s12, 1 }
  0x3a   : > { %686 = vmatprep.subr.bf16.mxu0 %v2380_v22 }
  0x3c   : > { %687 = vmatpush1.bf16.msra.mxu0 %v2382_v23  ;;  %2192 = vmatpush3.bf16.msra.mxu1 %v2383_v24 }
  0x3d   : > { %688 = vmatprep.subr.bf16.mxu0 %v2384_v25  ;;  %2193 = vmatprep.subr.bf16.mxu1 %v2594_v6 }
  0x40   : > { %689 = vmatpush1.bf16.msra.mxu0 %v2386_v26  ;;  %2194 = vmatpush3.bf16.msra.mxu1 %v2387_v27 }
  0x41   : > { %690 = vmatprep.subr.bf16.mxu0 %v2388_v28  ;;  %2195 = vmatprep.subr.bf16.mxu1 %v2594_v6 }
  0x44   : > { %691 = vmatpush1.bf16.msra.mxu0 %v2390_v30  ;;  %2196 = vmatpush3.bf16.msra.mxu1 %v2391_v31 }
  0x45   : > { %692 = vmatprep.subr.bf16.mxu0 %v2392_v32  ;;  %2197 = vmatprep.subr.bf16.mxu1 %v2594_v6 }
  0x48   : > { %693 = vmatpush1.bf16.msra.mxu0 %v2394_v33  ;;  %2198 = vmatpush3.bf16.msra.mxu1 %v2395_v34 }
  0x49   : > { %694 = vmatprep.subr.bf16.mxu0 %v2396_v35  ;;  %2199 = vmatprep.subr.bf16.mxu1 %v2594_v6 }
  0x4c   : > { %695 = vmatpush1.bf16.msra.mxu0 %v2398_v36  ;;  %2200 = vmatpush3.bf16.msra.mxu1 %v2399_v37 }
  0x4d   : > { %2205 = vmatprep.subr.bf16.mxu1 %v2594_v6  ;;  %2229 = vmatprep.subr.bf16.mxu0 %v2594_v6 }
  0xbe   : > { %v485_v8 = vpop.xlane.xlu0 %484 }
  0xbf   : > { %v489_v9 = vmul.f32 0.0078125, %v485_v8 }
  0xc1   : > { %v2773_v10 = vsub.f32 %v472_v2, %v489_v9 }
  0xc2   : > { %v487_v11 = vpop.xlane.xlu0 %486 }
  0xc3   : > { %v490_v12 = vmul.f32 0.0078125, %v487_v11  ;;  %v493_v13 = vmul.f32 %v2773_v10, %v2773_v10 }
  0xc5   : > { %v2777_v14 = vsub.f32 %v473_v3, %v490_v12  ;;  %495 = vadd.xlane.f32.xlu1 %v493_v13 }
  0xc7   : > { %v494_v15 = vmul.f32 %v2777_v14, %v2777_v14 }
  0xc9   : > { %497 = vadd.xlane.f32.xlu1 %v494_v15 }
 0x14e   : > { %v496_v38 = vpop.xlane.xlu1 %495 }
 0x14f   : > { %v499_v39 = vmul.f32 0.0078125, %v496_v38 }
 0x151   : > { %v501_v40 = vadd.f32 1e-06, %v499_v39 }
 0x152   : > { %v498_v41 = vpop.xlane.xlu1 %497 }
 0x153   : > { %2448 = vrsqrt.f32 %v501_v40  ;;  %v500_v42 = vmul.f32 0.0078125, %v498_v41 }
 0x155   : > { %v502_v43 = vadd.f32 1e-06, %v500_v42 }
 0x157   : > { %2450 = vrsqrt.f32 %v502_v43 }
 0x160   : > { %v2449_v44 = vpop.eup %2448 }
 0x161   : > { %v505_v45 = vmul.f32 %v2449_v44, %v2773_v10 }
 0x163   : > { %v511_v49 = vmul.f32 %v2035_v46, %v505_v45 }
 0x164   : > { %v2451_v47 = vpop.eup %2450 }
 0x165   : > { %v506_v48 = vmul.f32 %v2451_v47, %v2777_v14  ;;  %v2817_v52 = vadd.f32 %v2036_v50, %v511_v49 }
 0x167   : > { %v512_v51 = vmul.f32 %v2035_v46, %v506_v48 }
 0x169   : > { %v2819_v53 = vadd.f32 %v2036_v50, %v512_v51 }
 0x16b   : > { %v519_v54 = vpack.c.bf16 %v2819_v53, %v2817_v52 }
 0x16d   : > { %713 = vmatmul.mubr.bf16.vlgmr.msra.gmra.mxu0 %v519_v54  ;;  %2202 = vmatmul.mubr.bf16.vlgmr.msra.gmra.mxu1 %v519_v54 }
 0x16e   : > { %2207 = vmatprep.mubr.msk.bf16.mxu1 %vm2596_vm0, %v2594_v6  ;;  %2231 = vmatprep.mubr.msk.bf16.mxu0 %vm2596_vm0, %v2594_v6 }
 0x22d   : > { %v714_v55 = vpop.f32.mrf.mxu0  ;;  %v757_v56 = vpop.f32.mrf.mxu1 }
 0x22e   : > { %v768_v9 = vadd.f32 %v2061_v4, %v714_v55  ;;  %v780_v10 = vadd.f32 %v2063_v5, %v757_v56 }
 0x22f   : > { %v716_v57 = vpop.f32.mrf.mxu0  ;;  %v2203_v58 = vpop.f32.mrf.mxu1 }
 0x230   : > { %v774_v0 = vadd.f32 %v2062_v59, %v716_v57 }
 0x231   : > { %v718_v60 = vpop.f32.mrf.mxu0  ;;  %v760_v61 = vpop.f32.mrf.mxu1 }
 0x232   : > { %v769_v7 = vadd.f32 %v2061_v4, %v718_v60  ;;  %v781_v8 = vadd.f32 %v2063_v5, %v760_v61 }
 0x233   : > { %v720_v62 = vpop.f32.mrf.mxu0  ;;  %v2204_v63 = vpop.f32.mrf.mxu1 }
 0x234   : > { %v775_v1 = vadd.f32 %v2062_v59, %v720_v62  ;;  %v782_v11 = vpack.c.bf16 %v769_v7, %v768_v9  ;;  %v2832_v12 = vpack.c.bf16 %v781_v8, %v780_v10 }
 0x236   : > { %v783_v2 = vpack.c.bf16 %v775_v1, %v774_v0 }
 0x238   : > { %v790_v3 = vsel %vm785_vm1, %v783_v2, 0 }
 0x239   : > { %2206 = vmatpush3.bf16.xpose.msra.mxu1 %v790_v3 }
 0x23a   : > { %2211 = vmatprep.subr.bf16.mxu1 %v2594_v6 }
 0x240   : > { %2208 = vmatmul.mubr.msk.bf16.vlgmr.msra.gmra.mxu1 %vm785_vm1, %v782_v11 }
 0x241   : > { %2212 = vmatpush3.bf16.msra.mxu1 %v2832_v12  ;;  %2213 = vmatprep.mubr.msk.bf16.mxu1 %vm2596_vm0, %v2594_v6 }
 0x242   : > { %2217 = vmatprep.subr.bf16.mxu1 %v2594_v6 }
 0x300   : > { %v826_v13 = vpop.f32.mrf.mxu1 }
 0x301   : > { %v834_v14 = vsel %vm833_vm2, %v826_v13, -inf }
 0x302   : > { %835 = vmax.xlane.f32.xlu0 %v834_v14  ;;  %v2209_v15 = vpop.f32.mrf.mxu1 }
 0x304   : > { %v829_v16 = vpop.f32.mrf.mxu1 }
 0x305   : > { %v837_v17 = vsel %vm833_vm2, %v829_v16, -inf }
 0x306   : > { %838 = vmax.xlane.f32.xlu1 %v837_v17  ;;  %v2210_v18 = vpop.f32.mrf.mxu1 }
 0x38b   : > { %v836_v19 = vpop.xlane.xlu0 %835 }
 0x38c   : > { %v840_v20 = vsub.f32 %v826_v13, %v836_v19 }
 0x38e   : > { %v842_v21 = vmul.f32 1.442695, %v840_v20 }
 0x38f   : > { %v839_v22 = vpop.xlane.xlu1 %838 }
 0x390   : > { %2452 = vpow2.f32 %v842_v21  ;;  %v841_v23 = vsub.f32 %v829_v16, %v839_v22 }
 0x392   : > { %v844_v24 = vmul.f32 1.442695, %v841_v23 }
 0x394   : > { %2454 = vpow2.f32 %v844_v24 }
 0x39d   : > { %v2453_v25 = vpop.eup %2452 }
 0x39e   : > { %v846_v26 = vsel %vm833_vm2, %v2453_v25, 0.0 }
 0x39f   : > { %847 = vadd.xlane.f32.xlu0 %v846_v26 }
 0x3a1   : > { %v2455_v27 = vpop.eup %2454 }
 0x3a2   : > { %v849_v28 = vsel %vm833_vm2, %v2455_v27, 0.0 }
 0x3a3   : > { %850 = vadd.xlane.f32.xlu1 %v849_v28 }
 0x3b4   : > { %902 = vrot.lane.b32.xlu1 %v782_v11, %s2597_s9 }
 0x3b5   : > { %905 = vrot.lane.b32.xlu0 %v783_v2, %s2597_s9 }
 0x3b8   : > { %1027 = vrot.lane.b32.xlu1 %v783_v2, %s2598_s30 }
 0x3b9   : > { %1148 = vrot.lane.b32.xlu0 %v783_v2, %s2599_s16 }
 0x3bc   : > { %1025 = vrot.lane.b32.xlu1 %v782_v11, %s2598_s30 }
 0x3c0   : > { %1146 = vrot.lane.b32.xlu1 %v782_v11, %s2599_s16 }
 0x428   : > { %v848_v30 = vpop.xlane.xlu0 %847 }
 0x429   : > { %2456 = vrcp.f32 %v848_v30 }
 0x42c   : > { %v851_v31 = vpop.xlane.xlu1 %850  ;;  %v906_v33 = vpop.permute.xlu0 %905 }
 0x42d   : > { %2458 = vrcp.f32 %v851_v31  ;;  %v911_v44 = vsel %vm785_vm1, %v906_v33, 0 }
 0x430   : > { %v903_v32 = vpop.permute.xlu1 %902  ;;  %v1149_v38 = vpop.permute.xlu0 %1148 }
 0x431   : > { %v1154_v42 = vsel %vm785_vm1, %v1149_v38, 0 }
 0x434   : > { %v1028_v34 = vpop.permute.xlu1 %1027 }
 0x435   : > { %v1033_v35 = vsel %vm785_vm1, %v1028_v34, 0 }
 0x436   : > { %2230 = vmatpush3.bf16.xpose.msra.mxu0 %v1033_v35  ;;  %v2457_v36 = vpop.eup %2456 }
 0x437   : > { %2241 = vmatprep.subr.bf16.mxu0 %v2594_v6  ;;  %v854_v39 = vmul.f32 %v2457_v36, %v2453_v25 }
 0x438   : > { %v1026_v41 = vpop.permute.xlu1 %1025 }
 0x43a   : > { %v2459_v37 = vpop.eup %2458 }
 0x43b   : > { %v855_v40 = vmul.f32 %v2459_v37, %v2455_v27 }
 0x43c   : > { %v1147_v45 = vpop.permute.xlu1 %1146 }
 0x43d   : > { %2232 = vmatmul.mubr.msk.bf16.vlgmr.msra.gmra.mxu0 %vm785_vm1, %v1026_v41  ;;  %v856_v43 = vpack.c.bf16 %v855_v40, %v854_v39 }
 0x43e   : > { %2242 = vmatpush3.bf16.xpose.msra.mxu0 %v1154_v42  ;;  %2243 = vmatprep.mubr.msk.bf16.mxu0 %vm2596_vm0, %v2594_v6 }
 0x43f   : > { %2214 = vmatmul.mubr.msk.bf16.vlgmr.msra.gmra.mxu1 %vm833_vm2, %v856_v43  ;;  %2253 = vmatprep.subr.bf16.mxu0 %v2594_v6 }
 0x440   : > { %2218 = vmatpush3.bf16.xpose.msra.mxu1 %v911_v44  ;;  %2219 = vmatprep.mubr.msk.bf16.mxu1 %vm2596_vm0, %v2594_v6 }
 0x441   : > { %2223 = vmatprep.subr.bf16.mxu1 %v2594_v6 }
 0x445   : > { %2244 = vmatmul.mubr.msk.bf16.vlgmr.msra.gmra.mxu0 %vm785_vm1, %v1147_v45 }
 0x446   : > { %2269 = vmatprep.mubr.msk.bf16.mxu0 %vm2596_vm0, %v2594_v6 }
 0x447   : > { %2220 = vmatmul.mubr.msk.bf16.vlgmr.msra.gmra.mxu1 %vm785_vm1, %v903_v32 }
 0x448   : > { %2225 = vmatprep.mubr.msk.bf16.mxu1 %vm2596_vm0, %v2594_v6 }
 0x4fd   : > { %v1069_v46 = vpop.f32.mrf.mxu0 }
 0x4fe   : > { %v1076_v0 = vsel %vm833_vm2, %v1069_v46, -inf }
 0x4ff   : > { %v2867_v47 = vpop.f32.mrf.mxu1  ;;  %v2233_v48 = vpop.f32.mrf.mxu0 }
 0x501   : > { %v2215_v49 = vpop.f32.mrf.mxu1  ;;  %v1072_v50 = vpop.f32.mrf.mxu0 }
 0x502   : > { %v1079_v3 = vsel %vm833_vm2, %v1072_v50, -inf }
 0x503   : > { %v2869_v51 = vpop.f32.mrf.mxu1  ;;  %v2234_v54 = vpop.f32.mrf.mxu0 }
 0x505   : > { %v2216_v55 = vpop.f32.mrf.mxu1  ;;  %v1190_v56 = vpop.f32.mrf.mxu0 }
 0x506   : > { %v1197_v5 = vsel %vm833_vm2, %v1190_v56, -inf }
 0x507   : > { %v947_v57 = vpop.f32.mrf.mxu1  ;;  %v2245_v58 = vpop.f32.mrf.mxu0 }
 0x508   : > { %v954_v59 = vsel %vm833_vm2, %v947_v57, -inf }
 0x509   : > { %v1193_v60 = vpop.f32.mrf.mxu0  ;;  %955 = vmax.xlane.f32.xlu0 %v954_v59  ;;  %v2221_v61 = vpop.f32.mrf.mxu1 }
 0x50a   : > { %v1200_v4 = vsel %vm833_vm2, %v1193_v60, -inf }
 0x50b   : > { %v950_v62 = vpop.f32.mrf.mxu1  ;;  %v2246_v63 = vpop.f32.mrf.mxu0 }
 0x50c   : > { %v957_v1 = vsel %vm833_vm2, %v950_v62, -inf }
 0x50d   : > { %1077 = vmax.xlane.f32.xlu0 %v1076_v0  ;;  %958 = vmax.xlane.f32.xlu1 %v957_v1  ;;  %v2222_v2 = vpop.f32.mrf.mxu1 }
 0x50e   : > { %v2400_v2 = vld [vmem:[%s2749_s15 + $0x38] sm:$0xff]  }
 0x50f   : > { %2254 = vmatpush3.bf16.msra.mxu0 %v2400_v2  ;;  %v2422_v2 = vld [vmem:[%s2754_s0 + $0x34] ss:$8 sps:$4 sm:$0xff]  }
 0x510   : > { %2255 = vmatprep.subr.bf16.mxu0 %v2594_v6 }
 0x511   : > { %1080 = vmax.xlane.f32.xlu0 %v1079_v3  ;;  %1201 = vmax.xlane.f32.xlu1 %v1200_v4  ;;  %v2401_v3 = vld [vmem:[%s2749_s15 + $0x30] sm:$0xff]   ;;  %v2402_v4 = vld [vmem:[%s2749_s15 + $0x28] sm:$0xff]  }
 0x513   : > { %2256 = vmatpush3.bf16.msra.mxu0 %v2401_v3  ;;  %v2420_v3 = vld [vmem:[%s2754_s0 + $0x30] ss:$8 sps:$4 sm:$0xff]  }
 0x514   : > { %2257 = vmatprep.subr.bf16.mxu0 %v2594_v6 }
 0x515   : > { %1198 = vmax.xlane.f32.xlu0 %v1197_v5  ;;  %v2403_v5 = vld [vmem:[%s2749_s15 + $0x20] sm:$0xff]  }
 0x517   : > { %2258 = vmatpush3.bf16.msra.mxu0 %v2402_v4  ;;  %v2425_v4 = vld [vmem:[%s2754_s0 + $0x24] ss:$8 sps:$4 sm:$0xff]  }
 0x518   : > { %2259 = vmatprep.subr.bf16.mxu0 %v2594_v6 }
 0x51b   : > { %2260 = vmatpush3.bf16.msra.mxu0 %v2403_v5  ;;  %v2423_v5 = vld [vmem:[%s2754_s0 + $0x20] ss:$8 sps:$4 sm:$0xff]  }
 0x51c   : > { %2261 = vmatprep.subr.bf16.mxu0 %v2594_v6 }
 0x592   : > { %v956_v7 = vpop.xlane.xlu0 %955 }
 0x593   : > { %v960_v17 = vsub.f32 %v947_v57, %v956_v7  ;;  %v2404_v7 = vld [vmem:[%s2749_s15 + $0x18] sm:$0xff]  }
 0x594   : > { %2262 = vmatpush3.bf16.msra.mxu0 %v2404_v7  ;;  %v2428_v7 = vld [vmem:[%s2754_s0 + $0x14] ss:$8 sps:$4 sm:$0xff]  }
 0x595   : > { %v962_v23 = vmul.f32 1.442695, %v960_v17  ;;  %2263 = vmatprep.subr.bf16.mxu0 %v2594_v6  ;;  %v2407_v17 = vld [vmem:[%s2749_s15] sm:$0xff]  }
 0x596   : > { %v1078_v8 = vpop.xlane.xlu0 %1077  ;;  %v959_v9 = vpop.xlane.xlu1 %958 }
 0x597   : > { %v1082_v10 = vsub.f32 %v1069_v46, %v1078_v8  ;;  %v961_v18 = vsub.f32 %v950_v62, %v959_v9  ;;  %v2405_v9 = vld [vmem:[%s2749_s15 + $0x10] sm:$0xff]  }
 0x598   : > { %2264 = vmatpush3.bf16.msra.mxu0 %v2405_v9  ;;  %v2429_v9 = vld [vmem:[%s2754_s0] ss:$8 sps:$4 sm:$0xff]  }
 0x599   : > { %v1084_v11 = vmul.f32 1.442695, %v1082_v10  ;;  %v964_v24 = vmul.f32 1.442695, %v961_v18  ;;  %2265 = vmatprep.subr.bf16.mxu0 %v2594_v6 }
 0x59a   : > { %v1081_v13 = vpop.xlane.xlu0 %1080  ;;  %v1202_v14 = vpop.xlane.xlu1 %1201 }
 0x59b   : > { %2460 = vpow2.f32 %v1084_v11  ;;  %v1083_v15 = vsub.f32 %v1072_v50, %v1081_v13  ;;  %v1204_v16 = vsub.f32 %v1193_v60, %v1202_v14  ;;  %v2406_v13 = vld [vmem:[%s2749_s15 + $0x8] sm:$0xff]  }
 0x59c   : > { %2266 = vmatpush3.bf16.msra.mxu0 %v2406_v13 }
 0x59d   : > { %v1086_v19 = vmul.f32 1.442695, %v1083_v15  ;;  %v1207_v20 = vmul.f32 1.442695, %v1204_v16  ;;  %2267 = vmatprep.subr.bf16.mxu0 %v2594_v6 }
 0x59e   : > { %v1199_v21 = vpop.xlane.xlu0 %1198 }
 0x59f   : > { %2462 = vpow2.f32 %v1086_v19  ;;  %v1203_v22 = vsub.f32 %v1190_v56, %v1199_v21 }
 0x5a0   : > { %2464 = vpow2.f32 %v1207_v20  ;;  %2268 = vmatpush3.bf16.msra.mxu0 %v2407_v17 }
 0x5a1   : > { %v1205_v25 = vmul.f32 1.442695, %v1203_v22 }
 0x5a3   : > { %2466 = vpow2.f32 %v1205_v25 }
 0x5a4   : > { %2468 = vpow2.f32 %v962_v23 }
 0x5a5   : > { %2470 = vpow2.f32 %v964_v24 }
 0x5a8   : > { %v2461_v26 = vpop.eup %2460 }
 0x5a9   : > { %v1088_v27 = vsel %vm833_vm2, %v2461_v26, 0.0 }
 0x5aa   : > { %1089 = vadd.xlane.f32.xlu0 %v1088_v27 }
 0x5ac   : > { %v2463_v28 = vpop.eup %2462 }
 0x5ad   : > { %v1091_v30 = vsel %vm833_vm2, %v2463_v28, 0.0  ;;  %v2465_v31 = vpop.eup %2464 }
 0x5ae   : > { %1092 = vadd.xlane.f32.xlu1 %v1091_v30  ;;  %v1212_v35 = vsel %vm833_vm2, %v2465_v31, 0.0 }
 0x5b0   : > { %v2467_v32 = vpop.eup %2466 }
 0x5b1   : > { %v2469_v33 = vpop.eup %2468  ;;  %v1209_v34 = vsel %vm833_vm2, %v2467_v32, 0.0 }
 0x5b2   : > { %v2471_v36 = vpop.eup %2470  ;;  %1210 = vadd.xlane.f32.xlu0 %v1209_v34  ;;  %1213 = vadd.xlane.f32.xlu1 %v1212_v35  ;;  %v966_v37 = vsel %vm833_vm2, %v2469_v33, 0.0 }
 0x5b3   : > { %v969_v38 = vsel %vm833_vm2, %v2471_v36, 0.0 }
 0x5b6   : > { %967 = vadd.xlane.f32.xlu0 %v966_v37  ;;  %970 = vadd.xlane.f32.xlu1 %v969_v38 }
 0x5c7   : > { %1099 = vrot.lane.b32.xlu1 %v2832_v12, %s2598_s30 }
 0x5cb   : > { %1220 = vrot.lane.b32.xlu1 %v2832_v12, %s2599_s16 }
 0x5cc   : > { %978 = vrot.lane.b32.xlu0 %v2832_v12, %s2597_s9 }
 0x633   : > { %v1090_v39 = vpop.xlane.xlu0 %1089 }
 0x637   : > { %v1093_v40 = vpop.xlane.xlu1 %1092 }
 0x63b   : > { %v1211_v41 = vpop.xlane.xlu0 %1210  ;;  %v1214_v42 = vpop.xlane.xlu1 %1213 }
 0x63f   : > { %v968_v43 = vpop.xlane.xlu0 %967  ;;  %v971_v44 = vpop.xlane.xlu1 %970 }
 0x640   : > { %2472 = vrcp.f32 %v968_v43 }
 0x641   : > { %2474 = vrcp.f32 %v971_v44 }
 0x642   : > { %2476 = vrcp.f32 %v1093_v40 }
 0x643   : > { %v979_v45 = vpop.permute.xlu0 %978  ;;  %2478 = vrcp.f32 %v1090_v39  ;;  %v1100_v55 = vpop.permute.xlu1 %1099 }
 0x644   : > { %2224 = vmatpush3.bf16.msra.mxu1 %v979_v45  ;;  %2480 = vrcp.f32 %v1211_v41 }
 0x645   : > { %2235 = vmatprep.subr.bf16.mxu1 %v2594_v6  ;;  %2482 = vrcp.f32 %v1214_v42  ;;  %v2072_v42 = vld [vmem:[%s2734_s14 + $0x7] ss:$0 sm:$0xff] }
 0x647   : > { %v1221_v62 = vpop.permute.xlu1 %1220 }
 0x64d   : > { %v2473_v46 = vpop.eup %2472 }
 0x64e   : > { %v2475_v48 = vpop.eup %2474  ;;  %v974_v49 = vmul.f32 %v2473_v46, %v2469_v33 }
 0x64f   : > { %v975_v12 = vmul.f32 %v2475_v48, %v2471_v36  ;;  %v2477_v54 = vpop.eup %2476 }
 0x650   : > { %v2479_v56 = vpop.eup %2478  ;;  %v1097_v57 = vmul.f32 %v2477_v54, %v2463_v28 }
 0x651   : > { %v976_v50 = vpack.c.bf16 %v975_v12, %v974_v49  ;;  %v1096_v58 = vmul.f32 %v2479_v56, %v2461_v26  ;;  %v2481_v59 = vpop.eup %2480  ;;  %v2408_v12 = vld [vmem:[%s2754_s0 + $0x70] ss:$8 sps:$4 sm:$0xff]  }
 0x652   : > { %v2483_v61 = vpop.eup %2482  ;;  %v1217_v63 = vmul.f32 %v2481_v59, %v2467_v32 }
 0x653   : > { %2226 = vmatmul.mubr.msk.bf16.vlgmr.msra.gmra.mxu1 %vm833_vm2, %v976_v50  ;;  %v1098_v60 = vpack.c.bf16 %v1097_v57, %v1096_v58  ;;  %v1218_v0 = vmul.f32 %v2483_v61, %v2465_v31  ;;  %v2410_v50 = vld [vmem:[%s2754_s0 + $0x74] ss:$8 sps:$4 sm:$0xff]   ;;  %v2411_v61 = vld [vmem:[%s2754_s0 + $0x60] ss:$8 sps:$4 sm:$0xff]  }
 0x654   : > { %2236 = vmatpush3.bf16.msra.mxu1 %v1100_v55  ;;  %2237 = vmatprep.mubr.msk.bf16.mxu1 %vm2596_vm0, %v2594_v6 }
 0x655   : > { %2247 = vmatprep.subr.bf16.mxu1 %v2594_v6  ;;  %v1219_v1 = vpack.c.bf16 %v1218_v0, %v1217_v63  ;;  %v2414_v63 = vld [vmem:[%s2754_s0 + $0x50] ss:$8 sps:$4 sm:$0xff]   ;;  %v2417_v0 = vld [vmem:[%s2754_s0 + $0x40] ss:$8 sps:$4 sm:$0xff]  }
 0x65b   : > { %2238 = vmatmul.mubr.msk.bf16.vlgmr.msra.gmra.mxu1 %vm833_vm2, %v1098_v60  ;;  %v2413_v60 = vld [vmem:[%s2754_s0 + $0x64] ss:$8 sps:$4 sm:$0xff]  }
 0x65c   : > { %2248 = vmatpush3.bf16.msra.mxu1 %v1221_v62  ;;  %2249 = vmatprep.mubr.msk.bf16.mxu1 %vm2596_vm0, %v2594_v6  ;;  %v2416_v62 = vld [vmem:[%s2754_s0 + $0x54] ss:$8 sps:$4 sm:$0xff]  }
 0x65d   : > { %1553 = vmatprep.subr.bf16.mxu1 %v2410_v50 }
 0x663   : > { %2250 = vmatmul.mubr.msk.bf16.vlgmr.msra.gmra.mxu1 %vm833_vm2, %v1219_v1  ;;  %v2419_v1 = vld [vmem:[%s2754_s0 + $0x44] ss:$8 sps:$4 sm:$0xff]  }
 0x664   : > { %1585 = vmatprep.mubr.bf16.mxu1 %v2595_v29  ;;  %1554 = vmatpush1.bf16.msra.mxu1 %v2408_v12 }
 0x665   : > { %1555 = vmatprep.subr.bf16.mxu1 %v2413_v60 }
 0x668   : > { %1556 = vmatpush1.bf16.msra.mxu1 %v2411_v61 }
 0x669   : > { %1557 = vmatprep.subr.bf16.mxu1 %v2416_v62 }
 0x66c   : > { %1558 = vmatpush1.bf16.msra.mxu1 %v2414_v63 }
 0x66d   : > { %1559 = vmatprep.subr.bf16.mxu1 %v2419_v1 }
 0x670   : > { %1560 = vmatpush1.bf16.msra.mxu1 %v2417_v0 }
 0x671   : > { %1561 = vmatprep.subr.bf16.mxu1 %v2422_v2 }
 0x674   : > { %1562 = vmatpush1.bf16.msra.mxu1 %v2420_v3 }
 0x675   : > { %1563 = vmatprep.subr.bf16.mxu1 %v2425_v4 }
 0x678   : > { %1564 = vmatpush1.bf16.msra.mxu1 %v2423_v5 }
 0x679   : > { %1565 = vmatprep.subr.bf16.mxu1 %v2428_v7 }
 0x713   : > { %v1018_v29 = vpop.f32.mrf.mxu1 }
 0x715   : > { %v2227_v8 = vpop.f32.mrf.mxu1 }
 0x716   : > { %v2431_v8 = vld [vmem:[%s2754_s0 + $0x4] ss:$8 sps:$4 sm:$0xff]  }
 0x717   : > { %v1021_v10 = vpop.f32.mrf.mxu1 }
 0x718   : > { %v2353_v11 = vpack.i.bf16 %v1021_v10, %v1018_v29  ;;  %v2426_v29 = vld [vmem:[%s2754_s0 + $0x10] ss:$8 sps:$4 sm:$0xff]  }
 0x719   : > { %v2228_v14 = vpop.f32.mrf.mxu1  ;;  %1566 = vmatpush1.bf16.msra.mxu1 %v2426_v29 }
 0x71a   : > { %2354 = vrot.lane.b32.xlu1 %v2353_v11, %s2599_s16  ;;  %1567 = vmatprep.subr.bf16.mxu1 %v2431_v8 }
 0x71b   : > { %v1139_v15 = vpop.f32.mrf.mxu1 }
 0x71d   : > { %v2239_v16 = vpop.f32.mrf.mxu1  ;;  %1568 = vmatpush1.bf16.msra.mxu1 %v2429_v9 }
 0x71f   : > { %v1142_v18 = vpop.f32.mrf.mxu1 }
 0x720   : > { %v2358_v19 = vpack.i.bf16 %v1142_v18, %v1139_v15 }
 0x721   : > { %v2240_v20 = vpop.f32.mrf.mxu1 }
 0x722   : > { %2359 = vrot.lane.b32.xlu0 %v2358_v19, %s2598_s30  ;;  %v2081_v19 = vld [vmem:[%s2734_s14 + $0x2] ss:$0 sm:$0xff] }
 0x723   : > { %v1260_v21 = vpop.f32.mrf.mxu1 }
 0x725   : > { %v2251_v22 = vpop.f32.mrf.mxu1 }
 0x727   : > { %v1263_v23 = vpop.f32.mrf.mxu1 }
 0x728   : > { %v2363_v24 = vpack.i.bf16 %v1263_v23, %v1260_v21  ;;  %v2082_v23 = vld [vmem:[%s2734_s14 + $0x3] ss:$0 sm:$0xff] }
 0x729   : > { %v2252_v25 = vpop.f32.mrf.mxu1 }
 0x72a   : > { %2364 = vrot.lane.b32.xlu1 %v2363_v24, %s2597_s9 }
 0x78c   : > { %v2355_v26 = vpop.permute.xlu1 %2354 }
 0x78d   : > { %v2357_v28 = vunpack.i.h.bf16 %v2355_v26  ;;  %v2356_v30 = vunpack.i.l.bf16 %v2355_v26 }
 0x78f   : > { %v1292_v33 = vsel %vm785_vm1, %v2869_v51, %v2357_v28  ;;  %v1291_v34 = vsel %vm785_vm1, %v2867_v47, %v2356_v30  ;;  %v2432_v28 = vld [vmem:[%s2759_s25 + $0x78] sm:$0xff]  }
 0x790   : > { %v2433_v30 = vld [vmem:[%s2759_s25 + $0x38] sm:$0xff]   ;;  %2163 = vmatprep.subr.bf16.mxu0 %v2432_v28 }
 0x794   : > { %v2360_v27 = vpop.permute.xlu0 %2359 }
 0x795   : > { %v2362_v6 = vunpack.i.h.bf16 %v2360_v27  ;;  %v2361_v31 = vunpack.i.l.bf16 %v2360_v27 }
 0x797   : > { %v1295_v37 = vsel %vm1293_vm3, %v1292_v33, %v2362_v6  ;;  %v1294_v38 = vsel %vm1293_vm3, %v1291_v34, %v2361_v31  ;;  %v2434_v6 = vld [vmem:[%s2759_s25 + $0x70] sm:$0xff]   ;;  %v2437_v33 = vld [vmem:[%s2759_s25 + $0x28] sm:$0xff]   ;;  %v2438_v34 = vld [vmem:[%s2759_s25 + $0x60] sm:$0xff]  }
 0x798   : > { %v2435_v31 = vld [vmem:[%s2759_s25 + $0x30] sm:$0xff]  }
 0x79c   : > { %v2365_v32 = vpop.permute.xlu1 %2364 }
 0x79d   : > { %v2367_v35 = vunpack.i.h.bf16 %v2365_v32  ;;  %v2366_v36 = vunpack.i.l.bf16 %v2365_v32  ;;  %v2436_v32 = vld [vmem:[%s2759_s25 + $0x68] sm:$0xff]  }
 0x79f   : > { %v1298_v39 = vsel %vm1296_vm4, %v1295_v37, %v2367_v35  ;;  %v1297_v40 = vsel %vm1296_vm4, %v1294_v38, %v2366_v36  ;;  %v2439_v35 = vld [vmem:[%s2759_s25 + $0x20] sm:$0xff]   ;;  %v2440_v36 = vld [vmem:[%s2759_s25 + $0x58] sm:$0xff]   ;;  %v2442_v38 = vld [vmem:[%s2759_s25 + $0x50] sm:$0xff]  }
 0x7a0   : > { %v1299_v41 = vpack.c.bf16 %v1298_v39, %v1297_v40  ;;  %v2441_v37 = vld [vmem:[%s2759_s25 + $0x18] sm:$0xff]   ;;  %v2443_v39 = vld [vmem:[%s2759_s25 + $0x10] sm:$0xff]   ;;  %v2444_v40 = vld [vmem:[%s2759_s25 + $0x48] sm:$0xff]  }
 0x7a2   : > { %2270 = vmatmul.mubr.bf16.vlgmr.msra.gmra.mxu0 %v1299_v41  ;;  %v2445_v41 = vld [vmem:[%s2759_s25 + $0x8] sm:$0xff]  }
 0x7a3   : > { %2164 = vmatpush3.bf16.msra.mxu0 %v2433_v30 }
 0x7a4   : > { %2165 = vmatprep.subr.bf16.mxu0 %v2434_v6 }
 0x7a7   : > { %2166 = vmatpush3.bf16.msra.mxu0 %v2435_v31 }
 0x7a8   : > { %2167 = vmatprep.subr.bf16.mxu0 %v2436_v32 }
 0x7ab   : > { %2168 = vmatpush3.bf16.msra.mxu0 %v2437_v33 }
 0x7ac   : > { %2169 = vmatprep.subr.bf16.mxu0 %v2438_v34 }
 0x7af   : > { %2170 = vmatpush3.bf16.msra.mxu0 %v2439_v35 }
 0x7b0   : > { %2171 = vmatprep.subr.bf16.mxu0 %v2440_v36  ;;  %v2099_v36 = vld [vmem:[%s2734_s14 + $0x8] ss:$0 sm:$0xff] }
 0x7b3   : > { %2172 = vmatpush3.bf16.msra.mxu0 %v2441_v37 }
 0x7b4   : > { %2173 = vmatprep.subr.bf16.mxu0 %v2442_v38 }
 0x7b7   : > { %2174 = vmatpush3.bf16.msra.mxu0 %v2443_v39 }
 0x7b8   : > { %2175 = vmatprep.subr.bf16.mxu0 %v2444_v40 }
 0x7bb   : > { %2176 = vmatpush3.bf16.msra.mxu0 %v2445_v41 }
 0x862   : > { %v1402_v43 = vpop.f32.mrf.mxu0 }
 0x863   : > { %v1403_v44 = vadd.f32 %v2072_v42, %v1402_v43  ;;  %v2447_v43 = vld [vmem:[%s2759_s25] sm:$0xff]  }
 0x864   : > { %v2271_v45 = vpop.f32.mrf.mxu0 }
 0x865   : > { %v1409_v46 = vadd.f32 %v1403_v44, %v2817_v52  ;;  %v1463_v44 = vlaneseq }
 0x866   : > { %v1405_v51 = vpop.f32.mrf.mxu0 }
 0x867   : > { %v1406_v48 = vadd.f32 %v2072_v42, %v1405_v51  ;;  %1411 = vadd.xlane.f32.xlu0 %v1409_v46  ;;  %v2446_v42 = vld [vmem:[%s2759_s25 + $0x40] sm:$0xff]   ;;  %v1464_v45 = vshrl.u32 %v1463_v44, 7 }
 0x868   : > { %v2272_v47 = vpop.f32.mrf.mxu0  ;;  %2177 = vmatprep.subr.bf16.mxu0 %v2446_v42  ;;  %v483_v51 = vld [vmem:[%s2739_s26] sm:$0x3] }
 0x869   : > { %v1410_v49 = vadd.f32 %v1406_v48, %v2819_v53  ;;  %2178 = vmatpush3.bf16.msra.mxu0 %v2447_v43  ;;  %v1469_v48 = vsub.s32 1, %v1464_v45 }
 0x86b   : > { %1413 = vadd.xlane.f32.xlu1 %v1410_v49 }
 0x8f0   : > { %v1412_v54 = vpop.xlane.xlu0 %1411 }
 0x8f1   : > { %v1415_v55 = vmul.f32 0.0078125, %v1412_v54 }
 0x8f3   : > { %v1417_v56 = vsub.f32 %v1409_v46, %v1415_v55  ;;  %v1465_v46 = vsub.s32 0, %v1464_v45 }
 0x8f4   : > { %v1414_v52 = vpop.xlane.xlu1 %1413 }
 0x8f5   : > { %v1416_v57 = vmul.f32 0.0078125, %v1414_v52  ;;  %v1419_v58 = vmul.f32 %v1417_v56, %v1417_v56  ;;  %v1466_v47 = vrot.slane %v483_v51, %v1465_v46 }
 0x8f7   : > { %v1418_v59 = vsub.f32 %v1410_v49, %v1416_v57  ;;  %1421 = vadd.xlane.f32.xlu0 %v1419_v58  ;;  %v1470_v49 = vrot.slane %v483_v51, %v1469_v48 }
 0x8f9   : > { %v1420_v53 = vmul.f32 %v1418_v59, %v1418_v59 }
 0x8fb   : > { %1423 = vadd.xlane.f32.xlu0 %v1420_v53 }
 0x980   : > { %v1422_v10 = vpop.xlane.xlu0 %1421 }
 0x981   : > { %v1425_v11 = vmul.f32 0.0078125, %v1422_v10 }
 0x983   : > { %v1427_v13 = vadd.f32 1e-06, %v1425_v11 }
 0x984   : > { %v1424_v14 = vpop.xlane.xlu0 %1423 }
 0x985   : > { %2484 = vrsqrt.f32 %v1427_v13  ;;  %v1426_v15 = vmul.f32 0.0078125, %v1424_v14 }
 0x987   : > { %v1428_v16 = vadd.f32 1e-06, %v1426_v15 }
 0x989   : > { %2486 = vrsqrt.f32 %v1428_v16 }
 0x992   : > { %v2485_v17 = vpop.eup %2484 }
 0x993   : > { %v1431_v18 = vmul.f32 %v2485_v17, %v1417_v56 }
 0x995   : > { %v1437_v22 = vmul.f32 %v2081_v19, %v1431_v18 }
 0x996   : > { %v2487_v20 = vpop.eup %2486 }
 0x997   : > { %v1432_v21 = vmul.f32 %v2487_v20, %v1418_v59  ;;  %v2942_v25 = vadd.f32 %v2082_v23, %v1437_v22 }
 0x999   : > { %v1438_v24 = vmul.f32 %v2081_v19, %v1432_v21 }
 0x99b   : > { %v2944_v26 = vadd.f32 %v2082_v23, %v1438_v24 }
 0x99d   : > { %v1445_v27 = vpack.c.bf16 %v2944_v26, %v2942_v25 }
 0x99f   : > { %1586 = vmatmul.mubr.bf16.vlgmr.msra.gmra.mxu1 %v1445_v27 }
 0xa5f   : > { %v1587_v12 = vpop.f32.mrf.mxu1 }
 0xa60   : > { %v1588_v50 = vadd.f32 %v1587_v12, %v1466_v47 }
 0xa61   : > { %v1589_v54 = vpop.f32.mrf.mxu1 }
 0xa62   : > { %v1600_v55 = vmul.f32 0.044715, %v1588_v50  ;;  %v1590_v56 = vadd.f32 %v1589_v54, %v1470_v49  ;;  %v1596_v28 = vmul.f32 0.5, %v1588_v50 }
 0xa63   : > { %v1591_v52 = vpop.f32.mrf.mxu1 }
 0xa64   : > { %v1604_v57 = vmul.f32 %v1600_v55, %v1588_v50  ;;  %v1601_v58 = vmul.f32 0.044715, %v1590_v56  ;;  %v1592_v59 = vadd.f32 %v1591_v52, %v1466_v47  ;;  %v1597_v23 = vmul.f32 0.5, %v1590_v56 }
 0xa65   : > { %v1593_v53 = vpop.f32.mrf.mxu1 }
 0xa66   : > { %v1608_v60 = vmul.f32 %v1604_v57, %v1588_v50  ;;  %v1605_v61 = vmul.f32 %v1601_v58, %v1590_v56  ;;  %v1602_v62 = vmul.f32 0.044715, %v1592_v59  ;;  %v1594_v63 = vadd.f32 %v1593_v53, %v1470_v49 }
 0xa67   : > { %v1598_v21 = vmul.f32 0.5, %v1592_v59 }
 0xa68   : > { %v1612_v0 = vadd.f32 %v1608_v60, %v1588_v50  ;;  %v1609_v1 = vmul.f32 %v1605_v61, %v1590_v56  ;;  %v1606_v2 = vmul.f32 %v1602_v62, %v1592_v59  ;;  %v1603_v3 = vmul.f32 0.044715, %v1594_v63 }
 0xa69   : > { %v1599_v24 = vmul.f32 0.5, %v1594_v63 }
 0xa6a   : > { %v1610_v4 = vmul.f32 %v1606_v2, %v1592_v59  ;;  %v1607_v5 = vmul.f32 %v1603_v3, %v1594_v63  ;;  %v1613_v7 = vadd.f32 %v1609_v1, %v1590_v56  ;;  %v1616_v29 = vmul.f32 0.7978846, %v1612_v0 }
 0xa6c   : > { %v1614_v8 = vadd.f32 %v1610_v4, %v1592_v59  ;;  %v1611_v9 = vmul.f32 %v1607_v5, %v1594_v63  ;;  %v1617_v10 = vmul.f32 0.7978846, %v1613_v7 }
 0xa6e   : > { %v1618_v11 = vmul.f32 0.7978846, %v1614_v8  ;;  %v1615_v13 = vadd.f32 %v1611_v9, %v1594_v63  ;;  %2488 = vtanh.f32 %v1617_v10 }
 0xa6f   : > { %2490 = vtanh.f32 %v1616_v29 }
 0xa70   : > { %2492 = vtanh.f32 %v1618_v11  ;;  %v1619_v14 = vmul.f32 0.7978846, %v1615_v13 }
 0xa72   : > { %2494 = vtanh.f32 %v1619_v14 }
 0xa7b   : > { %v2489_v15 = vpop.eup %2488 }
 0xa7c   : > { %v2491_v16 = vpop.eup %2490  ;;  %v1625_v18 = vadd.f32 1.0, %v2489_v15 }
 0xa7d   : > { %v2493_v17 = vpop.eup %2492  ;;  %v1624_v22 = vadd.f32 1.0, %v2491_v16 }
 0xa7e   : > { %v1626_v19 = vadd.f32 1.0, %v2493_v17  ;;  %v1629_v6 = vmul.f32 %v1625_v18, %v1597_v23 }
 0xa7f   : > { %v2495_v20 = vpop.eup %2494  ;;  %v1628_v32 = vmul.f32 %v1624_v22, %v1596_v28 }
 0xa80   : > { %v1627_v27 = vadd.f32 1.0, %v2495_v20  ;;  %v1630_v30 = vmul.f32 %v1626_v19, %v1598_v21 }
 0xa82   : > { %v1631_v31 = vmul.f32 %v1627_v27, %v1599_v24  ;;  %v1632_v34 = vpack.c.bf16 %v1630_v30, %v1628_v32 }
 0xa84   : > { %v1633_v33 = vpack.c.bf16 %v1631_v31, %v1629_v6 }
 0xa86   : > { %1798 = vmatprep.mubr.bf16.mxu0 %v1633_v33 }
 0xa87   : > { %1799 = vmatmul.mubr.bf16.vlgmr.msra.gmra.mxu0 %v1632_v34 }
 0xb47   : > { %v2179_v35 = vpop.f32.mrf.mxu0 }
 0xb49   : > { %v2180_v37 = vpop.f32.mrf.mxu0 }
 0xb4a   : > { %v2181_v38 = vadd.f32 %v2180_v37, %v2179_v35 }
 0xb4b   : > { %v2182_v39 = vpop.f32.mrf.mxu0 }
 0xb4c   : > { %v1801_v40 = vadd.f32 %v2181_v38, %v2099_v36 }
 0xb4d   : > { %v2183_v41 = vpop.f32.mrf.mxu0 }
 0xb4e   : > { %v1807_v42 = vadd.f32 %v1801_v40, %v2942_v25  ;;  %v2184_v43 = vadd.f32 %v2183_v41, %v2182_v39 }
 0xb50   : > { %1809 = vst [vmem:[%s2761_s29] sm:$0xff] %v1807_v42  ;;  %v1804_v44 = vadd.f32 %v2184_v43, %v2099_v36  ;;  %1814 = sbr.rel (%p2116_p1) target bundleno = 3212 (0xc8c), region = 64 }
 0xb52   : > { %v1808_v45 = vadd.f32 %v1804_v44, %v2944_v26 }
 0xb54   : > { %1810 = vst [vmem:[%s2761_s29 + $0x8] sm:$0xff] %v1808_v45 }
 0xb55   : > { %1817 = vadd.xlane.f32.xlu0 %v1807_v42  ;;  %v2117_v59 = vld [vmem:[%s3048_s7] ss:$0 sm:$0xff] }
 0xb56   : > { %v2118_v60 = vld [vmem:[%s3049_s8] ss:$0 sm:$0xff] }
 0xb59   : > { %1819 = vadd.xlane.f32.xlu0 %v1808_v45 }
 0xbde   : > { %v1818_v46 = vpop.xlane.xlu0 %1817 }
 0xbdf   : > { %v1821_v51 = vmul.f32 0.0078125, %v1818_v46 }
 0xbe1   : > { %v1823_v48 = vsub.f32 %v1807_v42, %v1821_v51 }
 0xbe2   : > { %v1820_v47 = vpop.xlane.xlu0 %1819 }
 0xbe3   : > { %v1822_v49 = vmul.f32 0.0078125, %v1820_v47  ;;  %v1825_v12 = vmul.f32 %v1823_v48, %v1823_v48 }
 0xbe5   : > { %v1824_v50 = vsub.f32 %v1808_v45, %v1822_v49  ;;  %1827 = vadd.xlane.f32.xlu1 %v1825_v12 }
 0xbe7   : > { %v1826_v25 = vmul.f32 %v1824_v50, %v1824_v50 }
 0xbe9   : > { %1829 = vadd.xlane.f32.xlu1 %v1826_v25 }
 0xc6e   : > { %v1828_v54 = vpop.xlane.xlu1 %1827 }
 0xc6f   : > { %v1831_v55 = vmul.f32 0.0078125, %v1828_v54 }
 0xc71   : > { %v1833_v26 = vadd.f32 1e-06, %v1831_v55 }
 0xc72   : > { %v1830_v56 = vpop.xlane.xlu1 %1829 }
 0xc73   : > { %2496 = vrsqrt.f32 %v1833_v26  ;;  %v1832_v52 = vmul.f32 0.0078125, %v1830_v56 }
 0xc75   : > { %v1834_v57 = vadd.f32 1e-06, %v1832_v52 }
 0xc77   : > { %2498 = vrsqrt.f32 %v1834_v57 }
 0xc80   : > { %v2497_v58 = vpop.eup %2496 }
 0xc81   : > { %v1837_v53 = vmul.f32 %v2497_v58, %v1823_v48 }
 0xc83   : > { %v1845_v61 = vmul.f32 %v2117_v59, %v1837_v53 }
 0xc84   : > { %v2499_v62 = vpop.eup %2498 }
 0xc85   : > { %v1853_v63 = vadd.f32 %v2118_v60, %v1845_v61  ;;  %v1838_v0 = vmul.f32 %v2499_v62, %v1824_v50 }
 0xc87   : > { %1855 = vst [vmem:[%s2761_s29] sm:$0xff] %v1853_v63  ;;  %v1846_v1 = vmul.f32 %v2117_v59, %v1838_v0 }
 0xc89   : > { %v1854_v2 = vadd.f32 %v2118_v60, %v1846_v1 }
 0xc8b   : > { %1856 = vst [vmem:[%s2761_s29 + $0x8] sm:$0xff] %v1854_v2 }
 0xc8c PF: > { %s2128_s28 = sshll.u32 %s2580_s13, 8  ;;  %s3079_s20 = sld [smem:[#allocation16_spill]] }
 0xc8d   : > { %s1871_s18 = sshll.u32 %s2761_s29, 4  ;;  %s3080_s15 = sand.u32 1, %s2568_s10   ;;  %s2986_s18 = int_to_ptr.vmem [resolvable:$true] %s1871_s18 }
 0xc8e   : > { %s2990_s19 = scalar_lea.sflag [#allocation3], %s3080_s15  ;;  %s2500_s24 = scalar_lea.vmem %s2986_s18, 256 }
 0xc8f   : > { %p2501_p2 = scmp.ne.s32.totalorder %s2986_s18, %s2500_s24  ;;  %s2600_s13 = smov [#allocation2]  }
 0xc90   : > { %s2504_s11 = sshll.u32 %s2600_s13, 4  ;;  %s2505_s11 = int_to_ptr.vmem [resolvable:$false] %s2504_s11 }
 0xc91   : > { %p2502_p4 = pnand %p2501_p2, %p2702_p3  ;;  %s2506_s22 = scalar_lea.vmem %s2505_s11, 512 }
 0xc92   : > { %s2983_s17 = scalar_lea.hbm %s3079_s20, %s2128_s28  ;;  %p2507_p6 = scmp.lt.s32.totalorder %s2986_s18, %s2505_s11 }
 0xc93   : > { %p2503_p5 = pneg %p2502_p4  ;;  %p2508_p7 = scmp.lt.s32.totalorder %s2506_s22, %s2500_s24 }
 0xc95   : > { %p2509_p8 = por %p2508_p7, %p2507_p6 }
 0xc97   : > { %p2510_p10 = pnand %p2509_p8, %p2503_p5 }
 0xc99   : > { %2513 = shalt.err (!%p2510_p10)
}
 0xc9a   : > { %s2514_s25 = scalar_lea.hbm %s2983_s17, 256  ;;  %s2518_s30 = scalar_lea.hbm %s3079_s20, 512 }
 0xc9b   : > { %p2515_p11 = scmp.ne.s32.totalorder %s2983_s17, %s2514_s25  ;;  %p2519_p0 = scmp.lt.s32.totalorder %s2983_s17, %s3079_s20 }
 0xc9c   : > { %p2520_p1 = scmp.lt.s32.totalorder %s2518_s30, %s2514_s25 }
 0xc9d   : > { %p2516_p12 = pnand %p2515_p11, %p2702_p3 }
 0xc9e   : > { %p2521_p2 = por %p2520_p1, %p2519_p0 }
 0xc9f   : > { %p2517_p13 = pneg %p2516_p12 }
 0xca1   : > { %p2522_p4 = pnand %p2521_p2, %p2517_p13 }
 0xca3   : > { %2525 = shalt.err (!%p2522_p4)
}
 0xca4   : > { %s2601_s12 = smov 128   ;;  %s2602_s14 = smov 8  }
 0xca5   : > { %2274 = dma.vmem_to_hbm [thread:$0]  (%p2702_p3), %s2986_s18, 256, %s2983_s17, %s2990_s19, %s2601_s12, %s2601_s12, %s2602_s14  }
 0xca6 PF: > { %s3081_s21 = sld [smem:[#allocation9_spill]] }
 0xca7   : > { %s3082_s28 = sld [smem:[#allocation5_spill]] }
 0xcac   : > { %p2280_p5 = scmp.ge.s32.totalorder %s3081_s21, 2 }
 0xcad   : > { %s1886_s27 = sand.u32 1, %s3082_s28  }
 0xcae   : > { %p2277_p6 = pnand %p2280_p5, %p2712_p9  ;;  %s1887_s15 = scalar_lea.sflag [#allocation3], %s1886_s27 }
 0xcb0   : > { %p2278_p7 = pneg %p2277_p6 }
 0xcb2   : > { %2559 = dma.done.wait (%p2278_p7), %s1887_s15, 256  }
 0xcb3   : > { %2561 = vsyncadd (%p2278_p7), %s1887_s15, 4294967040  ;;  %s22_s16 = sadd.s32 1, %s3081_s21   ;;  %s3084_s24 = sld [smem:[#allocation6_spill]] }
 0xcb4   : > { %p19_p8 = scmp.ge.s32.totalorder %s22_s16, 6   ;;  %s3085_s11 = sld [smem:[#allocation14_spill]] }
 0xcb5   : > { %s3086_s12 = sld [smem:[#allocation7_spill]]  ;;  %s3090_s30 = smov %s2568_s10 }
 0xcb6   : > { %s3087_s13 = sld [smem:[#allocation8_spill]]  ;;  %21 = sbr.rel (!%p19_p8) target bundleno = 8 (0x8), region = 117 }
 0xcb7   : > { %s3088_s14 = sld [smem:[#allocation10_spill]] }
 0xcb8   : > { %s3089_s15 = sld [smem:[#allocation12_spill]] }
 0xcb9   : > { %s3091_s10 = smov %s3084_s24 }
 0xcbb   :  { %1892 = vsyncpa [#allocation3], 1 }
 0xcbc   :  { %1894 = vsyncpa [#allocation3 + $0x1], 1 }

</bundles_post_ra>
